<compile_context>
chip_gen: v7x
topology: tpu7x:2x2x1
jax: 0.10.0
libtpu: 0.0.40
codegen_flags: <defaults>
</compile_context>

<pallas_src>
import numpy as np
import jax
import jax.numpy as jnp
from jax.experimental import pallas as pl
from jax.experimental.pallas import tpu as pltpu

PRIMITIVES = ["skip", "conv3x3", "conv3x3_d2", "conv1x1"]
EMB_K = 5  # common spatial footprint: every primitive kernel embedded into 5x5
LANE = 128


# ----------------------------------------------------------------------------- helpers
def _fake_quant_int8(w):
    """Symmetric per-tensor 8-bit fake quantization of conv weights."""
    scale = jnp.maximum(jnp.max(jnp.abs(w)), 1e-8) / 127.0
    return jnp.round(w / scale) * scale


def _embed_kernel_5x5(w_oihw, dilation):
    """Embed a (C_out, C_in, kh, kw) kernel with given dilation into a
    (25*C_in, C_out) matrix whose row ordering matches the patch extraction
    (row = (kh5*5 + kw5)*C_in + c_in)."""
    C_out, C_in, kh, kw = w_oihw.shape
    eff_h = (kh - 1) * dilation + 1
    eff_w = (kw - 1) * dilation + 1
    off_h = (EMB_K - eff_h) // 2
    off_w = (EMB_K - eff_w) // 2
    w5 = jnp.zeros((EMB_K, EMB_K, C_in, C_out), dtype=w_oihw.dtype)
    for i in range(kh):
        for j in range(kw):
            w5 = w5.at[off_h + i * dilation, off_w + j * dilation].set(
                jnp.transpose(w_oihw[:, :, i, j], (1, 0)))
    return w5.reshape(EMB_K * EMB_K * C_in, C_out)


def _extract_patches(x_nhwc, stride):
    """im2col for a 5x5 window, padding=2.  Returns bf16 (N*Ho*Wo, 25*C), Ho, Wo."""
    N, H, W, C = x_nhwc.shape
    pad = EMB_K // 2
    xp = jnp.pad(x_nhwc, ((0, 0), (pad, pad), (pad, pad), (0, 0)))
    Ho = (H + 2 * pad - EMB_K) // stride + 1
    Wo = (W + 2 * pad - EMB_K) // stride + 1
    cols = []
    for kh in range(EMB_K):
        for kw in range(EMB_K):
            sl = xp[:, kh:kh + stride * (Ho - 1) + 1:stride,
                    kw:kw + stride * (Wo - 1) + 1:stride, :]
            cols.append(sl)  # (N, Ho, Wo, C)
    patches = jnp.stack(cols, axis=3)            # (N, Ho, Wo, 25, C)
    patches = patches.reshape(N * Ho * Wo, EMB_K * EMB_K * C)
    # bf16 inputs: full-rate MXU on v5e/v6e/v7x and half the HBM bytes for the
    # 25x-inflated patch stream (accumulation stays f32 in the kernel).
    return patches.astype(jnp.bfloat16), Ho, Wo


def _pack_wide(weights, biases, relu_flags, coeffs, c_pad):
    """Pack per-op tables into the lane-dense wide layout.

    weights : (n_ops, K, C_out) f32 -> (K, n_ops*c_pad) bf16
    biases  : (n_ops, C_out)        -> (1, n_ops*c_pad) f32
    relu    : (n_ops,)              -> floor row: 0.0 (relu) or -FLT_MAX (identity)
    coeffs  : (n_ops,)              -> (1, n_ops*c_pad) f32 (broadcast per op)
    """
    n_ops, K, C_out = weights.shape
    neg = jnp.finfo(jnp.float32).min
    w_pad = jnp.pad(weights, ((0, 0), (0, 0), (0, c_pad - C_out)))
    w_wide = jnp.transpose(w_pad, (1, 0, 2)).reshape(K, n_ops * c_pad)
    w_wide = w_wide.astype(jnp.bfloat16)
    b_pad = jnp.pad(biases, ((0, 0), (0, c_pad - C_out)))
    bias_row = b_pad.reshape(1, n_ops * c_pad).astype(jnp.float32)
    floor = jnp.where(relu_flags[:, None] > 0.5, 0.0, neg)
    floor_row = jnp.broadcast_to(floor, (n_ops, c_pad)).reshape(1, n_ops * c_pad)
    coeff_row = jnp.broadcast_to(coeffs[:, None].astype(jnp.float32),
                                 (n_ops, c_pad)).reshape(1, n_ops * c_pad)
    return w_wide, bias_row, floor_row.astype(jnp.float32), coeff_row


# ----------------------------------------------------------------------------- Pallas kernel
def _mixedop_kernel(patches_ref, w_ref, bias_ref, floor_ref, coeff_ref, out_ref):
    """grid = (M_tiles,) — single fully-parallel axis (v7x 2-TC shardable).

    One lane-dense (tm, K) @ (K, n_ops*c_pad) MXU matmul covers all candidate
    ops; bias / relu / coeff and the op-sum run on the VPU over the same tile.
    """
    n_wide = w_ref.shape[1]
    c_pad = out_ref.shape[1]
    n_ops = n_wide // c_pad

    y = jnp.dot(patches_ref[...], w_ref[...], preferred_element_type=jnp.float32)
    y = y + bias_ref[...]                 # folded-BN bias per (op, channel)
    y = jnp.maximum(y, floor_ref[...])    # relu where flagged (floor 0), else identity
    y = y * coeff_ref[...]                # alpha_i * r0 * r1 (* beta_j), exact semantics

    acc = y[:, 0:c_pad]                   # static, lane-aligned (x128) slices
    for i in range(1, n_ops):
        acc = acc + y[:, i * c_pad:(i + 1) * c_pad]
    out_ref[...] = acc


def _choose_tm(M, target=512):
    """Large tiles amortize per-step overhead; small problems still get >=2
    (even) tiles so v7x can use both TensorCores."""
    if M >= 2 * target:
        return target
    half = -(-M // 2)
    tm = -(-half // 8) * 8               # sublane multiple
    return max(8, min(tm, target))


def _mixed_matmul(patches, w_wide, bias_row, floor_row, coeff_row, c_pad, tm=512):
    M, K = patches.shape
    n_wide = w_wide.shape[1]
    tm = _choose_tm(M, tm)
    M_pad = pl.cdiv(M, tm) * tm
    if M_pad != M:
        # TODO(synk): handle the ragged last tile with an in-kernel mask instead
        # of this wrapper-side pad (it is bf16, so half the bytes of before).
        patches = jnp.pad(patches, ((0, M_pad - M), (0, 0)))
    grid = (M_pad // tm,)
    out = pl.pallas_call(
        _mixedop_kernel,
        out_shape=jax.ShapeDtypeStruct((M_pad, c_pad), jnp.float32),
        grid=grid,
        in_specs=[
            pl.BlockSpec((tm, K), lambda m: (m, 0)),       # bf16 patches (streamed)
            pl.BlockSpec((K, n_wide), lambda m: (0, 0)),   # bf16 wide weights (VMEM-resident)
            pl.BlockSpec((1, n_wide), lambda m: (0, 0)),   # bias row (resident)
            pl.BlockSpec((1, n_wide), lambda m: (0, 0)),   # relu-floor row (resident)
            pl.BlockSpec((1, n_wide), lambda m: (0, 0)),   # coeff row (resident)
        ],
        out_specs=pl.BlockSpec((tm, c_pad), lambda m: (m, 0)),   # lane-dense store
        compiler_params=pltpu.CompilerParams(
            dimension_semantics=("parallel",),
            vmem_limit_bytes=32 * 1024 * 1024),            # within v7x's 64 MiB physical
    )(patches, w_wide, bias_row, floor_row, coeff_row)
    return out[:M]


# ----------------------------------------------------------------------------- MixedOp
def init_mixedop_params(key, C_in, C_out):
    params = []
    for prim in PRIMITIVES:
        key, k1, k2, k3, k4, k5 = jax.random.split(key, 6)
        if prim == "skip":
            params.append(None)
            continue
        if prim == "conv3x3":
            k, d = 3, 1
        elif prim == "conv3x3_d2":
            k, d = 3, 2
        else:  # conv1x1
            k, d = 1, 1
        fan_in = C_in * k * k
        w = jax.random.normal(k1, (C_out, C_in, k, k), jnp.float32) / np.sqrt(fan_in)
        gamma = 1.0 + 0.1 * jax.random.normal(k2, (C_out,), jnp.float32)
        beta = 0.1 * jax.random.normal(k3, (C_out,), jnp.float32)
        mean = 0.1 * jax.random.normal(k4, (C_out,), jnp.float32)
        var = 0.5 + jax.random.uniform(k5, (C_out,), jnp.float32)
        params.append(dict(w=w, k=k, d=d, gamma=gamma, beta=beta, mean=mean, var=var))
    return params


class MixedOpPallas:
    def __init__(self, C_in, C_out, stride=1, slimmable=True,
                 width_mult_list=(1.0,), quantize=True, key=None):
        self.C_in, self.C_out, self.stride = C_in, C_out, stride
        self.slimmable = slimmable
        self.width_mult_list = list(width_mult_list)
        self.quantize = quantize
        self.params = init_mixedop_params(key, C_in, C_out)

    def _build_tables(self, c_in_act, c_out_act, quantize):
        """Fold BN into (stacked) embedded 5x5 weights + biases; apply slimmable
        channel masking and optional fake quantization.  Returns f32 per-op
        stacks (weights (n_ops,K,C_out), biases (n_ops,C_out), relu flags)."""
        eps = 1e-5
        Ws, Bs, relu = [], [], []
        in_mask = (jnp.arange(self.C_in) < c_in_act).astype(jnp.float32)
        out_mask = (jnp.arange(self.C_out) < c_out_act).astype(jnp.float32)
        for prim, p in zip(PRIMITIVES, self.params):
            if prim == "skip":
                eye = jnp.eye(self.C_in, self.C_out, dtype=jnp.float32)
                eye = eye * in_mask[:, None] * out_mask[None, :]
                w_emb = jnp.zeros((EMB_K * EMB_K * self.C_in, self.C_out), jnp.float32)
                center = (EMB_K // 2) * EMB_K + (EMB_K // 2)
                w_emb = w_emb.at[center * self.C_in:(center + 1) * self.C_in, :].set(eye)
                Ws.append(w_emb)
                Bs.append(jnp.zeros((self.C_out,), jnp.float32))
                relu.append(0.0)
                continue
            w = p["w"]
            # TODO(synk): slimmable USConv actually slices channels (make_divisible);
            # here pruned in/out channels are zero-masked keeping the full C_out shape.
            w = w * in_mask[None, :, None, None] * out_mask[:, None, None, None]
            if quantize:
                # quantize after masking so the int8 scale matches a sliced conv
                w = _fake_quant_int8(w)
            scale = p["gamma"] / jnp.sqrt(p["var"] + eps)
            bias = (p["beta"] - scale * p["mean"]) * out_mask
            Ws.append(_embed_kernel_5x5(w * scale[:, None, None, None], p["d"]))
            Bs.append(bias)
            relu.append(1.0)
        return jnp.stack(Ws), jnp.stack(Bs), jnp.array(relu, jnp.float32)

    def _prepare(self, x_nchw, alpha, beta, ratio):
        def resolve(r):
            if isinstance(r, (jnp.ndarray, np.ndarray)) and np.ndim(r) > 0:
                idx = int(np.argmax(np.asarray(r)))
                return self.width_mult_list[idx], jnp.asarray(r, jnp.float32)[idx]
            return float(r), jnp.float32(1.0)

        ratio0, r_score0 = resolve(ratio[0])
        ratio1, r_score1 = resolve(ratio[1])
        if self.slimmable:
            c_in_act = max(1, int(round(self.C_in * ratio0)))
            c_out_act = max(1, int(round(self.C_out * ratio1)))
        else:
            c_in_act, c_out_act = self.C_in, self.C_out

        N = x_nchw.shape[0]
        x_nhwc = jnp.transpose(x_nchw, (0, 2, 3, 1))
        patches, Ho, Wo = _extract_patches(x_nhwc, self.stride)

        alpha = jnp.asarray(alpha, jnp.float32)
        scale = r_score0 * r_score1
        if self.quantize == "search":
            beta = jnp.asarray(beta, jnp.float32)
            Wf, Bf, Rf = self._build_tables(c_in_act, c_out_act, quantize=False)
            Wq, Bq, Rq = self._build_tables(c_in_act, c_out_act, quantize=True)
            weights = jnp.concatenate([Wf, Wq], axis=0)
            biases = jnp.concatenate([Bf, Bq], axis=0)
            relu_flags = jnp.concatenate([Rf, Rq], axis=0)
            coeffs = jnp.concatenate([beta[0] * alpha, beta[1] * alpha]) * scale
        else:
            weights, biases, relu_flags = self._build_tables(
                c_in_act, c_out_act, quantize=bool(self.quantize))
            coeffs = alpha * scale

        c_pad = ((self.C_out + LANE - 1) // LANE) * LANE    # lane-dense output width
        w_wide, bias_row, floor_row, coeff_row = _pack_wide(
            weights, biases, relu_flags, coeffs, c_pad)
        return dict(patches=patches, w_wide=w_wide, bias_row=bias_row,
                    floor_row=floor_row, coeff_row=coeff_row, c_pad=c_pad,
                    N=N, Ho=Ho, Wo=Wo,
                    weights=weights, biases=biases, relu_flags=relu_flags,
                    coeffs=coeffs.astype(jnp.float32))

    def forward(self, x_nchw, alpha, beta, ratio):
        t = self._prepare(x_nchw, alpha, beta, ratio)
        out_flat = _mixed_matmul(t["patches"], t["w_wide"], t["bias_row"],
                                 t["floor_row"], t["coeff_row"], t["c_pad"])
        out = out_flat[:, :self.C_out].reshape(t["N"], t["Ho"], t["Wo"], self.C_out)
        return jnp.transpose(out, (0, 3, 1, 2))   # back to NCHW


# ----------------------------------------------------------------------------- reference (XLA conv)
def _reference_from_tables(x_nchw, weights, biases, coeffs, relu_flags, stride):
    """Same bf16-rounded inputs / f32 accumulation as the kernel path."""
    n_ops, K, C_out = weights.shape
    C_in = K // (EMB_K * EMB_K)
    x_bf = x_nchw.astype(jnp.bfloat16)
    result = 0.0
    for i in range(n_ops):
        w_hwio = weights[i].reshape(EMB_K, EMB_K, C_in, C_out).astype(jnp.bfloat16)
        y = jax.lax.conv_general_dilated(
            x_bf, w_hwio, window_strides=(stride, stride),
            padding=((2, 2), (2, 2)),
            dimension_numbers=("NCHW", "HWIO", "NCHW"),
            preferred_element_type=jnp.float32)
        y = y + biases[i][None, :, None, None]
        y = jnp.where(relu_flags[i] > 0.5, jnp.maximum(y, 0.0), y)
        result = result + coeffs[i] * y
    return result


# ----------------------------------------------------------------------------- main
if __name__ == "__main__":
    key = jax.random.PRNGKey(0)
    k_x, k_p, k_a, k_b, k_r0, k_r1 = jax.random.split(key, 6)

    N, C_in, C_out, H, W = 2, 8, 8, 16, 16
    width_mult_list = [0.5, 0.75, 1.0]

    x = jax.random.normal(k_x, (N, C_in, H, W), jnp.float32)
    alpha = jax.nn.softmax(jax.random.normal(k_a, (len(PRIMITIVES),), jnp.float32))
    beta = jax.nn.softmax(jax.random.normal(k_b, (2,), jnp.float32))
    ratio = (jax.nn.softmax(jax.random.normal(k_r0, (len(width_mult_list),), jnp.float32)),
             jax.nn.softmax(jax.random.normal(k_r1, (len(width_mult_list),), jnp.float32)))

    op = MixedOpPallas(C_in, C_out, stride=1, slimmable=True,
                       width_mult_list=width_mult_list, quantize=True, key=k_p)

    out = op.forward(x, alpha, beta, ratio)
    out = jax.block_until_ready(out)

    # correctness check of the Pallas hot path against an XLA conv reference
    t = op._prepare(x, alpha, beta, ratio)
    ref = _reference_from_tables(x, t["weights"], t["biases"], t["coeffs"],
                                 t["relu_flags"], op.stride)
    np.testing.assert_allclose(np.asarray(out), np.asarray(ref), rtol=5e-3, atol=5e-3)
    assert out.shape == (N, C_out, t["Ho"], t["Wo"])

    # TODO(synk): forward_latency / forward_flops are lookup-table bookkeeping
    # (no tensor compute) and are not implemented as kernels.
    print("KERNEL_OK")
</pallas_src>

<mosaic_0001>
module attributes {stable_mosaic.version = 11 : i64} {
  func.func @_mixedop_kernel(%arg0: i32, %arg1: memref<256x200xbf16, #tpu.memory_space<vmem>>, %arg2: memref<200x512xbf16, #tpu.memory_space<vmem>>, %arg3: memref<1x512xf32, #tpu.memory_space<vmem>>, %arg4: memref<1x512xf32, #tpu.memory_space<vmem>>, %arg5: memref<1x512xf32, #tpu.memory_space<vmem>>, %arg6: memref<256x128xf32, #tpu.memory_space<vmem>>) attributes {dimension_semantics = [#tpu.dimension_semantics<parallel>], iteration_bounds = array<i64: 2>, scalar_prefetch = 0 : i64, scratch_operands = 0 : i64, tpu.core_type = #tpu.core_type<tc>, window_params = [{transform_indices = @transform_0, window_bounds = array<i64: 256, 200>}, {pipeline_mode = #tpu.pipeline_mode<synchronous>, transform_indices = @transform_1, window_bounds = array<i64: 200, 512>}, {pipeline_mode = #tpu.pipeline_mode<synchronous>, transform_indices = @transform_2, window_bounds = array<i64: 1, 512>}, {pipeline_mode = #tpu.pipeline_mode<synchronous>, transform_indices = @transform_3, window_bounds = array<i64: 1, 512>}, {pipeline_mode = #tpu.pipeline_mode<synchronous>, transform_indices = @transform_4, window_bounds = array<i64: 1, 512>}, {transform_indices = @transform_5, window_bounds = array<i64: 256, 128>}]} {
    %c0 = arith.constant 0 : index
    %c0_0 = arith.constant 0 : index
    %0 = vector.load %arg1[%c0, %c0_0] : memref<256x200xbf16, #tpu.memory_space<vmem>>, vector<256x200xbf16>
    %c0_1 = arith.constant 0 : index
    %c0_2 = arith.constant 0 : index
    %1 = vector.load %arg2[%c0_1, %c0_2] : memref<200x512xbf16, #tpu.memory_space<vmem>>, vector<200x512xbf16>
    %cst = arith.constant dense<0.000000e+00> : vector<256x512xf32>
    %2 = tpu.matmul %0, %1, %cst {dimension_numbers = #tpu.dot_dimension_numbers<[1], [0], [0], [1], [0, 0, 1, 1], [], []>} : vector<256x200xbf16>, vector<200x512xbf16>, vector<256x512xf32> -> vector<256x512xf32>
    %c0_3 = arith.constant 0 : index
    %c0_4 = arith.constant 0 : index
    %3 = vector.load %arg3[%c0_3, %c0_4] : memref<1x512xf32, #tpu.memory_space<vmem>>, vector<1x512xf32>
    %4 = vector.broadcast %3 : vector<1x512xf32> to vector<256x512xf32>
    %5 = arith.addf %2, %4 : vector<256x512xf32>
    %c0_5 = arith.constant 0 : index
    %c0_6 = arith.constant 0 : index
    %6 = vector.load %arg4[%c0_5, %c0_6] : memref<1x512xf32, #tpu.memory_space<vmem>>, vector<1x512xf32>
    %7 = vector.broadcast %6 : vector<1x512xf32> to vector<256x512xf32>
    %8 = arith.maximumf %5, %7 : vector<256x512xf32>
    %c0_7 = arith.constant 0 : index
    %c0_8 = arith.constant 0 : index
    %9 = vector.load %arg5[%c0_7, %c0_8] : memref<1x512xf32, #tpu.memory_space<vmem>>, vector<1x512xf32>
    %10 = vector.broadcast %9 : vector<1x512xf32> to vector<256x512xf32>
    %11 = arith.mulf %8, %10 : vector<256x512xf32>
    %12 = vector.extract_strided_slice %11 {offsets = [0, 0], sizes = [256, 128], strides = [1, 1]} : vector<256x512xf32> to vector<256x128xf32>
    %13 = vector.extract_strided_slice %11 {offsets = [0, 128], sizes = [256, 128], strides = [1, 1]} : vector<256x512xf32> to vector<256x128xf32>
    %14 = arith.addf %12, %13 : vector<256x128xf32>
    %15 = vector.extract_strided_slice %11 {offsets = [0, 256], sizes = [256, 128], strides = [1, 1]} : vector<256x512xf32> to vector<256x128xf32>
    %16 = arith.addf %14, %15 : vector<256x128xf32>
    %17 = vector.extract_strided_slice %11 {offsets = [0, 384], sizes = [256, 128], strides = [1, 1]} : vector<256x512xf32> to vector<256x128xf32>
    %18 = arith.addf %16, %17 : vector<256x128xf32>
    %c0_9 = arith.constant 0 : index
    %c0_10 = arith.constant 0 : index
    %19 = vector.load %arg6[%c0_9, %c0_10] : memref<256x128xf32, #tpu.memory_space<vmem>>, vector<256x128xf32>
    tpu.vector_store %arg6[%c0_9, %c0_10], %18 {strides = array<i32>} : memref<256x128xf32, #tpu.memory_space<vmem>>, vector<256x128xf32>,
    return
  }
  func.func @transform_0(%arg0: i32) -> (i32, i32) {
    %c0_i32 = arith.constant 0 : i32
    %c0_i32_0 = arith.constant 0 : i32
    return %arg0, %c0_i32 : i32, i32
  }
  func.func @transform_1(%arg0: i32) -> (i32, i32) {
    %c0_i32 = arith.constant 0 : i32
    %c0_i32_0 = arith.constant 0 : i32
    %c0_i32_1 = arith.constant 0 : i32
    return %c0_i32, %c0_i32_0 : i32, i32
  }
  func.func @transform_2(%arg0: i32) -> (i32, i32) {
    %c0_i32 = arith.constant 0 : i32
    %c0_i32_0 = arith.constant 0 : i32
    %c0_i32_1 = arith.constant 0 : i32
    return %c0_i32, %c0_i32_0 : i32, i32
  }
  func.func @transform_3(%arg0: i32) -> (i32, i32) {
    %c0_i32 = arith.constant 0 : i32
    %c0_i32_0 = arith.constant 0 : i32
    %c0_i32_1 = arith.constant 0 : i32
    return %c0_i32, %c0_i32_0 : i32, i32
  }
  func.func @transform_4(%arg0: i32) -> (i32, i32) {
    %c0_i32 = arith.constant 0 : i32
    %c0_i32_0 = arith.constant 0 : i32
    %c0_i32_1 = arith.constant 0 : i32
    return %c0_i32, %c0_i32_0 : i32, i32
  }
  func.func @transform_5(%arg0: i32) -> (i32, i32) {
    %c0_i32 = arith.constant 0 : i32
    %c0_i32_0 = arith.constant 0 : i32
    return %arg0, %c0_i32 : i32, i32
  }
}

</mosaic_0001>

<bundles_post_ra>
// kernel: tpu_custom_call.1
= control target key start
LH: loop header
LB: loop body
LE: loop exit
PB: predicated region body
PF: predicated region fallthrough
CT: control target
= control target key end

     0   :  { %10 = vsyncpa [#allocation3], 0  ;;  %s2849_s0 = inlined_call_operand.vmem [shape: bf16[512,200], index: 0, kind: input, shape index: {}]   ;;  %s2850_s1 = inlined_call_operand.vmem [shape: bf16[200,512], index: 1, kind: input, shape index: {}]   ;;  %s2851_s2 = inlined_call_operand.vmem [shape: f32[1,512], index: 2, kind: input, shape index: {}]   ;;  %s2852_s3 = inlined_call_operand.vmem [shape: f32[1,512], index: 3, kind: input, shape index: {}]   ;;  %s2853_s4 = inlined_call_operand.vmem [shape: f32[1,512], index: 4, kind: input, shape index: {}]   ;;  %s2854_s5 = inlined_call_operand.hbm [shape: f32[512,128], index: 5, kind: output, shape index: {}]  }
   0x1   :  { %12 = vsyncpa [#allocation3 + $0x1], 0  ;;  %s2075_s18 = smov 0   ;;  %s2077_s19 = smov 0  }
   0x2   :  { %s2079_s20 = smov 0   ;;  %s2081_s21 = smov 0  }
   0x3 LB: > { %s2096_s22 = sadd.s32 4294967295, %s2040_s21   ;;  %s1680_s23 = sadd.s32 4294967294, %s2040_s21   ;;  %s2040_s21 = sphi %s2081_s21, %s2860_s21   ;;  %s2036_s20 = sphi %s2079_s20, %s2859_s20   ;;  %s2032_s19 = sphi %s2077_s19, %s2858_s19   ;;  %s2028_s18 = sphi %s2075_s18, %s2857_s18  }
   0x4   : > { %s2100_s24 = sadd.s32 1, %s2040_s21   ;;  %s135_s25 = sadd.s32 1, %s2036_s20 }
   0x5   : > { %s132_s26 = ssub.s32 %s2040_s21, %s2100_s24  ;;  %p145_p0 = scmp.ne.s32.totalorder %s2036_s20, %s2032_s19 }
   0x6   : > { %p133_p1 = scmp.eq.s32.totalorder %s132_s26, 0  ;;  %p146_p2 = scmp.eq.s32.totalorder %s2096_s22, 1 }
   0x7   : > { %p151_p3 = scmp.ne.s32.totalorder %s2032_s19, %s2028_s18  ;;  %p152_p4 = scmp.eq.s32.totalorder %s1680_s23, 1 }
   0x8   : > { %s2111_s27 = scalar_select %p133_p1, %s2036_s20, %s135_s25  }
   0x9   : > { %p2113_p5 = por %p146_p2, %p145_p0  ;;  %p2117_p6 = por %p152_p4, %p151_p3 }
   0xa   : > { %p1683_p7 = scmp.ge.s32.totalorder %s2040_s21, 1  ;;  %p192_p8 = scmp.lt.s32.totalorder %s2040_s21, 3 }
   0xc   : > { %p193_p9 = pnand %p1683_p7, %p192_p8 }
   0xd   : > { %v1854_v0 = vld [vmem:[%s2850_s1 + $0x4] ss:$16 sps:$4 sm:$0xff] (!%p193_p9)   ;;  %v1856_v1 = vld [vmem:[%s2850_s1 + $0xc] ss:$16 sps:$4 sm:$0xff] (!%p193_p9)   ;;  %v1858_v2 = vld [vmem:[%s2850_s1] ss:$16 sps:$4 sm:$0xff] (!%p193_p9)  }
   0xe   : > { %196 = sbr.rel (%p193_p9) target bundleno = 430 (0x1ae), region = 40  ;;  %790 = vmatprep.subr.bf16.mxu0 (!%p193_p9), %v1854_v0  ;;  %v1859_v3 = vld [vmem:[%s2850_s1 + $0x8] ss:$16 sps:$4 sm:$0xff] (!%p193_p9)   ;;  %983 = vmatprep.subr.bf16.mxu1 (!%p193_p9), %v1856_v1  ;;  %v1860_v4 = vld [vmem:[%s2850_s1 + $0x24] ss:$16 sps:$4 sm:$0xff] (!%p193_p9)   ;;  %s1685_s15 = sshll.u32 (!%p193_p9), %s2096_s22, 5 }
   0xf   : > { %791 = vmatpush1.bf16.msra.mxu0 (!%p193_p9), %v1858_v2  ;;  %984 = vmatpush1.bf16.msra.mxu1 (!%p193_p9), %v1859_v3  ;;  %v1862_v5 = vld [vmem:[%s2850_s1 + $0x2c] ss:$16 sps:$4 sm:$0xff] (!%p193_p9)   ;;  %v1864_v6 = vld [vmem:[%s2850_s1 + $0x20] ss:$16 sps:$4 sm:$0xff] (!%p193_p9)   ;;  %v1865_v7 = vld [vmem:[%s2850_s1 + $0x28] ss:$16 sps:$4 sm:$0xff] (!%p193_p9)  }
  0x10   : > { %792 = vmatprep.subr.bf16.mxu0 (!%p193_p9), %v1860_v4  ;;  %985 = vmatprep.subr.bf16.mxu1 (!%p193_p9), %v1862_v5  ;;  %v1866_v8 = vld [vmem:[%s2850_s1 + $0x44] ss:$16 sps:$4 sm:$0xff] (!%p193_p9)   ;;  %v1868_v9 = vld [vmem:[%s2850_s1 + $0x4c] ss:$16 sps:$4 sm:$0xff] (!%p193_p9)   ;;  %v1870_v10 = vld [vmem:[%s2850_s1 + $0x40] ss:$16 sps:$4 sm:$0xff] (!%p193_p9)  }
  0x11   : > { %v1871_v11 = vld [vmem:[%s2850_s1 + $0x48] ss:$16 sps:$4 sm:$0xff] (!%p193_p9)   ;;  %v1872_v12 = vld [vmem:[%s2850_s1 + $0x64] ss:$16 sps:$4 sm:$0xff] (!%p193_p9)   ;;  %v1874_v13 = vld [vmem:[%s2850_s1 + $0x6c] ss:$16 sps:$4 sm:$0xff] (!%p193_p9)  }
  0x12   : > { %v1876_v14 = vld [vmem:[%s2850_s1 + $0x60] ss:$16 sps:$4 sm:$0xff] (!%p193_p9)   ;;  %v1877_v15 = vld [vmem:[%s2850_s1 + $0x68] ss:$16 sps:$4 sm:$0xff] (!%p193_p9)   ;;  %v1878_v16 = vld [vmem:[%s2850_s1 + $0x84] ss:$16 sps:$4 sm:$0xff] (!%p193_p9)  }
  0x13   : > { %793 = vmatpush1.bf16.msra.mxu0 (!%p193_p9), %v1864_v6  ;;  %986 = vmatpush1.bf16.msra.mxu1 (!%p193_p9), %v1865_v7  ;;  %v1880_v17 = vld [vmem:[%s2850_s1 + $0x8c] ss:$16 sps:$4 sm:$0xff] (!%p193_p9)   ;;  %v1882_v18 = vld [vmem:[%s2850_s1 + $0x80] ss:$16 sps:$4 sm:$0xff] (!%p193_p9)   ;;  %v1883_v19 = vld [vmem:[%s2850_s1 + $0x88] ss:$16 sps:$4 sm:$0xff] (!%p193_p9)  }
  0x14   : > { %794 = vmatprep.subr.bf16.mxu0 (!%p193_p9), %v1866_v8  ;;  %987 = vmatprep.subr.bf16.mxu1 (!%p193_p9), %v1868_v9  ;;  %v1884_v20 = vld [vmem:[%s2850_s1 + $0xa4] ss:$16 sps:$4 sm:$0xff] (!%p193_p9)   ;;  %v1886_v21 = vld [vmem:[%s2850_s1 + $0xac] ss:$16 sps:$4 sm:$0xff] (!%p193_p9)   ;;  %v1888_v22 = vld [vmem:[%s2850_s1 + $0xa0] ss:$16 sps:$4 sm:$0xff] (!%p193_p9)  }
  0x15   : > { %p222_p10 = scmp.lt.s32.totalorder %s1685_s15, 63  ;;  %v1889_v23 = vld [vmem:[%s2850_s1 + $0xa8] ss:$16 sps:$4 sm:$0xff]   ;;  %v1890_v24 = vld [vmem:[%s2850_s1 + $0xc4] ss:$16 sps:$4 sm:$0xff]   ;;  %vm728_vm0 = vcmask 588800  }
  0x16   : > { %v1892_v25 = vld [vmem:[%s2850_s1 + $0xcc] ss:$16 sps:$4 sm:$0xff]   ;;  %v1894_v26 = vld [vmem:[%s2850_s1 + $0xc0] ss:$16 sps:$4 sm:$0xff]   ;;  %v1895_v27 = vld [vmem:[%s2850_s1 + $0xc8] ss:$16 sps:$4 sm:$0xff]  }
  0x17   : > { %795 = vmatpush1.bf16.msra.mxu0 %v1870_v10  ;;  %988 = vmatpush1.bf16.msra.mxu1 %v1871_v11  ;;  %s2862_s15 = smov (!%p222_p10, %s1685_s15), 63  ;;  %v1896_v28 = vld [vmem:[%s2850_s1 + $0xe4] ss:$16 sps:$4 sm:$0xff]   ;;  %v1898_v29 = vld [vmem:[%s2850_s1 + $0xec] ss:$16 sps:$4 sm:$0xff]   ;;  %vm777_vm1 = vcmask 1043456  }
  0x18   : > { %796 = vmatprep.subr.bf16.mxu0 %v1872_v12  ;;  %989 = vmatprep.subr.bf16.mxu1 %v1874_v13  ;;  %v1900_v30 = vld [vmem:[%s2850_s1 + $0xe0] ss:$16 sps:$4 sm:$0xff]   ;;  %s1811_s30 = sshll.u32 %s2862_s15, 3  ;;  %v1901_v31 = vld [vmem:[%s2850_s1 + $0xe8] ss:$16 sps:$4 sm:$0xff]   ;;  %s218_s6 = sand.u32 1, %s2032_s19  }
  0x19   : > { %v1902_v32 = vld [vmem:[%s2850_s1 + $0x104] ss:$16 sps:$4 sm:$0xff]   ;;  %v1904_v33 = vld [vmem:[%s2850_s1 + $0x10c] ss:$16 sps:$4 sm:$0xff]   ;;  %s2229_s15 = scalar_lea.vmem %s2849_s0, %s1811_s30  ;;  %v1906_v34 = vld [vmem:[%s2850_s1 + $0x100] ss:$16 sps:$4 sm:$0xff]  }
  0x1a   : > { %v1907_v35 = vld [vmem:[%s2850_s1 + $0x108] ss:$16 sps:$4 sm:$0xff]   ;;  %v1908_v36 = vld [vmem:[%s2850_s1 + $0x124] ss:$16 sps:$4 sm:$0xff]   ;;  %v1910_v37 = vld [vmem:[%s2850_s1 + $0x12c] ss:$16 sps:$4 sm:$0xff]  }
  0x1b   : > { %797 = vmatpush1.bf16.msra.mxu0 %v1876_v14  ;;  %990 = vmatpush1.bf16.msra.mxu1 %v1877_v15  ;;  %v1932_v38 = vld [vmem:[%s2229_s15 + $0x4] ss:$8 sps:$4 sm:$0xff]   ;;  %v1912_v39 = vld [vmem:[%s2850_s1 + $0x120] ss:$16 sps:$4 sm:$0xff]   ;;  %v1913_v40 = vld [vmem:[%s2850_s1 + $0x128] ss:$16 sps:$4 sm:$0xff]  }
  0x1c   : > { %798 = vmatprep.subr.bf16.mxu0 %v1878_v16  ;;  %991 = vmatprep.subr.bf16.mxu1 %v1880_v17  ;;  %v1914_v41 = vld [vmem:[%s2850_s1 + $0x144] ss:$16 sps:$4 sm:$0xff]   ;;  %v1916_v42 = vld [vmem:[%s2850_s1 + $0x14c] ss:$16 sps:$4 sm:$0xff]   ;;  %v1918_v43 = vld [vmem:[%s2850_s1 + $0x140] ss:$16 sps:$4 sm:$0xff]  }
  0x1d   : > { %1773 = vmatprep.mubr.msk.bf16.mxu0 %vm728_vm0, %v1932_v38  ;;  %1790 = vmatprep.mubr.msk.bf16.mxu1 %vm728_vm0, %v1932_v38  ;;  %v1919_v44 = vld [vmem:[%s2850_s1 + $0x148] ss:$16 sps:$4 sm:$0xff]   ;;  %v1920_v45 = vld [vmem:[%s2850_s1 + $0x164] ss:$16 sps:$4 sm:$0xff]   ;;  %v1922_v46 = vld [vmem:[%s2850_s1 + $0x16c] ss:$16 sps:$4 sm:$0xff]  }
  0x1e   : > { %v310_v47 = vld [vmem:[%s2850_s1 + $0x180] sm:$0xff]  ;;  %v311_v48 = vld [vmem:[%s2850_s1 + $0x188] sm:$0xff]  ;;  %v1933_v58 = vld [vmem:[%s2229_s15 + $0x14] ss:$8 sps:$4 sm:$0xff]   ;;  %s1684_s7 = sshll.u32 %s218_s6, 8  ;;  %s1812_s9 = sshll.u32 %s2096_s22, 12 }
  0x1f   : > { %799 = vmatpush1.bf16.msra.mxu0 %v1882_v18  ;;  %992 = vmatpush1.bf16.msra.mxu1 %v1883_v19  ;;  %v1924_v49 = vld [vmem:[%s2850_s1 + $0x160] ss:$16 sps:$4 sm:$0xff]   ;;  %v1925_v50 = vld [vmem:[%s2850_s1 + $0x168] ss:$16 sps:$4 sm:$0xff]   ;;  %v1769_v51 = vcombine.high %v310_v47, %v310_v47  ;;  %v1771_v52 = vcombine.high %v311_v48, %v311_v48  ;;  %v1768_v53 = vcombine.low %v310_v47, %v310_v47  ;;  %v1936_v60 = vld [vmem:[%s2229_s15 + $0x24] ss:$8 sps:$4 sm:$0xff]   ;;  %s2801_s13 = scalar_lea.hbm %s2854_s5, %s1812_s9 }
  0x20   : > { %800 = vmatprep.subr.bf16.mxu0 %v1884_v20  ;;  %993 = vmatprep.subr.bf16.mxu1 %v1886_v21  ;;  %v1770_v54 = vcombine.low %v311_v48, %v311_v48  ;;  %v1930_v57 = vld [vmem:[%s2229_s15] ss:$8 sps:$4 sm:$0xff]   ;;  %v1935_v59 = vld [vmem:[%s2229_s15 + $0x10] ss:$8 sps:$4 sm:$0xff]   ;;  %v1939_v62 = vld [vmem:[%s2229_s15 + $0x34] ss:$8 sps:$4 sm:$0xff]  }
  0x21   : > { %v779_v55 = vsel %vm777_vm1, %v1768_v53, 0  ;;  %v1938_v61 = vld [vmem:[%s2229_s15 + $0x20] ss:$8 sps:$4 sm:$0xff]   ;;  %v1941_v63 = vld [vmem:[%s2229_s15 + $0x30] ss:$8 sps:$4 sm:$0xff]   ;;  %s2415_s8 = scalar_lea.vmem [#allocation2], %s1684_s7 }
  0x22   : > { %v785_v56 = vsel %vm777_vm1, %v1770_v54, 0  ;;  %v1942_v0 = vld [vmem:[%s2229_s15 + $0x44] ss:$8 sps:$4 sm:$0xff]   ;;  %v1944_v1 = vld [vmem:[%s2229_s15 + $0x40] ss:$8 sps:$4 sm:$0xff]   ;;  %s1618_s10 = sshll.u32 %s2415_s8, 4  ;;  %s2803_s10 = int_to_ptr.vmem [resolvable:$true] %s1618_s10 }
  0x23   : > { %801 = vmatpush1.bf16.msra.mxu0 %v1888_v22  ;;  %994 = vmatpush1.bf16.msra.mxu1 %v1889_v23  ;;  %v1945_v2 = vld [vmem:[%s2229_s15 + $0x54] ss:$8 sps:$4 sm:$0xff]   ;;  %v1947_v3 = vld [vmem:[%s2229_s15 + $0x50] ss:$8 sps:$4 sm:$0xff]   ;;  %v1948_v4 = vld [vmem:[%s2229_s15 + $0x64] ss:$8 sps:$4 sm:$0xff]  }
  0x24   : > { %802 = vmatprep.subr.bf16.mxu0 %v1890_v24  ;;  %995 = vmatprep.subr.bf16.mxu1 %v1892_v25  ;;  %v1950_v5 = vld [vmem:[%s2229_s15 + $0x60] ss:$8 sps:$4 sm:$0xff]   ;;  %v1951_v6 = vld [vmem:[%s2229_s15 + $0x74] ss:$8 sps:$4 sm:$0xff]   ;;  %v1953_v7 = vld [vmem:[%s2229_s15 + $0x70] ss:$8 sps:$4 sm:$0xff]   ;;  %v314_v24 = vlaneseq }
  0x25   : > { %v1954_v8 = vld [vmem:[%s2229_s15 + $0x84] ss:$8 sps:$4 sm:$0xff]   ;;  %v1956_v9 = vld [vmem:[%s2229_s15 + $0x80] ss:$8 sps:$4 sm:$0xff]   ;;  %v1957_v10 = vld [vmem:[%s2229_s15 + $0x94] ss:$8 sps:$4 sm:$0xff]  }
  0x26   : > { %v1959_v11 = vld [vmem:[%s2229_s15 + $0x90] ss:$8 sps:$4 sm:$0xff]   ;;  %v1960_v12 = vld [vmem:[%s2229_s15 + $0xa4] ss:$8 sps:$4 sm:$0xff]   ;;  %v1962_v13 = vld [vmem:[%s2229_s15 + $0xa0] ss:$8 sps:$4 sm:$0xff]  }
  0x27   : > { %803 = vmatpush1.bf16.msra.mxu0 %v1894_v26  ;;  %996 = vmatpush1.bf16.msra.mxu1 %v1895_v27  ;;  %v1963_v14 = vld [vmem:[%s2229_s15 + $0xb4] ss:$8 sps:$4 sm:$0xff]   ;;  %v1965_v15 = vld [vmem:[%s2229_s15 + $0xb0] ss:$8 sps:$4 sm:$0xff]   ;;  %v1966_v16 = vld [vmem:[%s2229_s15 + $0xc4] ss:$8 sps:$4 sm:$0xff]  }
  0x28   : > { %804 = vmatprep.subr.bf16.mxu0 %v1896_v28  ;;  %997 = vmatprep.subr.bf16.mxu1 %v1898_v29  ;;  %v1968_v17 = vld [vmem:[%s2229_s15 + $0xc0] ss:$8 sps:$4 sm:$0xff]   ;;  %v1969_v18 = vld [vmem:[%s2229_s15 + $0xd4] ss:$8 sps:$4 sm:$0xff]   ;;  %v1971_v19 = vld [vmem:[%s2229_s15 + $0xd0] ss:$8 sps:$4 sm:$0xff]  }
  0x29   : > { %v1972_v20 = vld [vmem:[%s2229_s15 + $0xe4] ss:$8 sps:$4 sm:$0xff]   ;;  %v1974_v21 = vld [vmem:[%s2229_s15 + $0xe0] ss:$8 sps:$4 sm:$0xff]   ;;  %v1975_v22 = vld [vmem:[%s2229_s15 + $0xf4] ss:$8 sps:$4 sm:$0xff]  }
  0x2a   : > { %v1977_v23 = vld [vmem:[%s2229_s15 + $0xf0] ss:$8 sps:$4 sm:$0xff]   ;;  %v315_v25 = vshrl.u32 %v314_v24, 7  ;;  %v312_v28 = vld [vmem:[%s2851_s2] sm:$0xf]  ;;  %s2808_s14 = scalar_lea.sflag [#allocation3], %s218_s6 }
  0x2b   : > { %805 = vmatpush1.bf16.msra.mxu0 %v1900_v30  ;;  %998 = vmatpush1.bf16.msra.mxu1 %v1901_v31  ;;  %v1176_v31 = vld [vmem:[%s2852_s3] sm:$0xf]  ;;  %s1978_s22 = scalar_lea.vmem %s2803_s10, 4096  ;;  %s2042_s16 = smov [#allocation2]  }
  0x2c   : > { %806 = vmatprep.subr.bf16.mxu0 %v1902_v32  ;;  %999 = vmatprep.subr.bf16.mxu1 %v1904_v33  ;;  %v316_v26 = vsub.s32 0, %v315_v25  ;;  %v324_v27 = vsub.s32 2, %v315_v25  ;;  %v320_v29 = vsub.s32 1, %v315_v25  ;;  %v328_v30 = vsub.s32 3, %v315_v25  ;;  %p1979_p11 = scmp.ne.s32.totalorder %s2803_s10, %s1978_s22  ;;  %s1982_s17 = sshll.u32 %s2042_s16, 4  ;;  %s1983_s17 = int_to_ptr.vmem [resolvable:$false] %s1982_s17 }
  0x2d   : > { %s1984_s23 = scalar_lea.vmem %s1983_s17, 8192  ;;  %p1985_p0 = scmp.lt.s32.totalorder %s2803_s10, %s1983_s17 }
  0x2e   : > { %v2349_v32 = vrot.slane %v312_v28, %v316_v26  ;;  %v2351_v33 = vrot.slane %v312_v28, %v324_v27  ;;  %v2362_v38 = vrot.slane %v1176_v31, %v324_v27  ;;  %v2370_v47 = vrot.slane %v1176_v31, %v328_v30  ;;  %p1980_p12 = pnand %p1979_p11, %p2113_p5  ;;  %p1986_p1 = scmp.lt.s32.totalorder %s1984_s23, %s1978_s22 }
  0x2f   : > { %807 = vmatpush1.bf16.msra.mxu0 %v1906_v34  ;;  %1000 = vmatpush1.bf16.msra.mxu1 %v1907_v35  ;;  %v1326_v34 = vld [vmem:[%s2853_s4] sm:$0xf]  ;;  %v2356_v35 = vrot.slane %v312_v28, %v320_v29 }
  0x30   : > { %808 = vmatprep.subr.bf16.mxu0 %v1908_v36  ;;  %1001 = vmatprep.subr.bf16.mxu1 %v1910_v37  ;;  %v2358_v36 = vrot.slane %v312_v28, %v328_v30  ;;  %v2360_v37 = vrot.slane %v1176_v31, %v316_v26  ;;  %v2372_v48 = vrot.slane %v1326_v34, %v324_v27  ;;  %p1981_p13 = pneg %p1980_p12  ;;  %p1987_p2 = por %p1986_p1, %p1985_p0 }
  0x32   : > { %p1988_p3 = pnand %p1987_p2, %p1981_p13 }
  0x33   : > { %809 = vmatpush1.bf16.msra.mxu0 %v1912_v39  ;;  %1002 = vmatpush1.bf16.msra.mxu1 %v1913_v40 }
  0x34   : > { %810 = vmatprep.subr.bf16.mxu0 %v1914_v41  ;;  %1003 = vmatprep.subr.bf16.mxu1 %v1916_v42  ;;  %v2364_v41 = vrot.slane %v1176_v31, %v320_v29 }
  0x37   : > { %811 = vmatpush1.bf16.msra.mxu0 %v1918_v43  ;;  %1004 = vmatpush1.bf16.msra.mxu1 %v1919_v44  ;;  %v2367_v43 = vrot.slane %v1326_v34, %v316_v26 }
  0x38   : > { %812 = vmatprep.subr.bf16.mxu0 %v1920_v45  ;;  %1005 = vmatprep.subr.bf16.mxu1 %v1922_v46 }
  0x3b   : > { %813 = vmatpush1.bf16.msra.mxu0 %v1924_v49  ;;  %1006 = vmatpush1.bf16.msra.mxu1 %v1925_v50  ;;  %v2375_v50 = vrot.slane %v1326_v34, %v320_v29 }
  0x3c   : > { %1772 = vmatprep.subr.msk.bf16.mxu0 %vm777_vm1, %v1769_v51  ;;  %1789 = vmatprep.subr.msk.bf16.mxu1 %vm777_vm1, %v1771_v52 }
  0x3f   : > { %815 = vmatpush1.bf16.msra.mxu0 %v779_v55  ;;  %1008 = vmatpush1.bf16.msra.mxu1 %v785_v56 }
  0x42   : > { %823 = vmatmul.mubr.bf16.vlgmr.msra.gmra.mrb[0].mxu0 %v1930_v57  ;;  %1016 = vmatmul.mubr.bf16.vlgmr.msra.gmra.mrb[0].mxu1 %v1930_v57 }
  0x43   : > { %1774 = vmatprep.mubr.msk.bf16.mxu0 %vm728_vm0, %v1933_v58  ;;  %1791 = vmatprep.mubr.msk.bf16.mxu1 %vm728_vm0, %v1933_v58 }
  0x4a   : > { %833 = vmatmul.mubr.bf16.gmra.mrb[4].mxu0 %v1935_v59  ;;  %1026 = vmatmul.mubr.bf16.gmra.mrb[4].mxu1 %v1935_v59 }
  0x4b   : > { %1775 = vmatprep.mubr.msk.bf16.mxu0 %vm728_vm0, %v1936_v60  ;;  %1792 = vmatprep.mubr.msk.bf16.mxu1 %vm728_vm0, %v1936_v60 }
  0x52   : > { %843 = vmatmul.mubr.bf16.gmra.mrb[8].mxu0 %v1938_v61  ;;  %1036 = vmatmul.mubr.bf16.gmra.mrb[8].mxu1 %v1938_v61  ;;  %v2383_v61 = vrot.slane %v1326_v34, %v328_v30 }
  0x53   : > { %1776 = vmatprep.mubr.msk.bf16.mxu0 %vm728_vm0, %v1939_v62  ;;  %1793 = vmatprep.mubr.msk.bf16.mxu1 %vm728_vm0, %v1939_v62 }
  0x5a   : > { %853 = vmatmul.mubr.bf16.gmra.mrb[12].mxu0 %v1941_v63  ;;  %1046 = vmatmul.mubr.bf16.gmra.mrb[12].mxu1 %v1941_v63 }
  0x5b   : > { %1777 = vmatprep.mubr.msk.bf16.mxu0 %vm728_vm0, %v1942_v0  ;;  %1794 = vmatprep.mubr.msk.bf16.mxu1 %vm728_vm0, %v1942_v0 }
  0x62   : > { %863 = vmatmul.mubr.bf16.gmra.mrb[16].mxu0 %v1944_v1  ;;  %1056 = vmatmul.mubr.bf16.gmra.mrb[16].mxu1 %v1944_v1 }
  0x63   : > { %1778 = vmatprep.mubr.msk.bf16.mxu0 %vm728_vm0, %v1945_v2  ;;  %1795 = vmatprep.mubr.msk.bf16.mxu1 %vm728_vm0, %v1945_v2 }
  0x6a   : > { %873 = vmatmul.mubr.bf16.gmra.mrb[20].mxu0 %v1947_v3  ;;  %1066 = vmatmul.mubr.bf16.gmra.mrb[20].mxu1 %v1947_v3 }
  0x6b   : > { %1779 = vmatprep.mubr.msk.bf16.mxu0 %vm728_vm0, %v1948_v4  ;;  %1796 = vmatprep.mubr.msk.bf16.mxu1 %vm728_vm0, %v1948_v4 }
  0x72   : > { %883 = vmatmul.mubr.bf16.gmra.mrb[24].mxu0 %v1950_v5  ;;  %1076 = vmatmul.mubr.bf16.gmra.mrb[24].mxu1 %v1950_v5 }
  0x73   : > { %1780 = vmatprep.mubr.msk.bf16.mxu0 %vm728_vm0, %v1951_v6  ;;  %1797 = vmatprep.mubr.msk.bf16.mxu1 %vm728_vm0, %v1951_v6 }
  0x7a   : > { %893 = vmatmul.mubr.bf16.gmra.mrb[28].mxu0 %v1953_v7  ;;  %1086 = vmatmul.mubr.bf16.gmra.mrb[28].mxu1 %v1953_v7 }
  0x7b   : > { %1781 = vmatprep.mubr.msk.bf16.mxu0 %vm728_vm0, %v1954_v8  ;;  %1798 = vmatprep.mubr.msk.bf16.mxu1 %vm728_vm0, %v1954_v8 }
  0x82   : > { %903 = vmatmul.mubr.bf16.gmra.mrb[32].mxu0 %v1956_v9  ;;  %1096 = vmatmul.mubr.bf16.gmra.mrb[32].mxu1 %v1956_v9 }
  0x83   : > { %1782 = vmatprep.mubr.msk.bf16.mxu0 %vm728_vm0, %v1957_v10  ;;  %1799 = vmatprep.mubr.msk.bf16.mxu1 %vm728_vm0, %v1957_v10 }
  0x8a   : > { %913 = vmatmul.mubr.bf16.gmra.mrb[36].mxu0 %v1959_v11  ;;  %1106 = vmatmul.mubr.bf16.gmra.mrb[36].mxu1 %v1959_v11 }
  0x8b   : > { %1783 = vmatprep.mubr.msk.bf16.mxu0 %vm728_vm0, %v1960_v12  ;;  %1800 = vmatprep.mubr.msk.bf16.mxu1 %vm728_vm0, %v1960_v12 }
  0x92   : > { %923 = vmatmul.mubr.bf16.gmra.mrb[40].mxu0 %v1962_v13  ;;  %1116 = vmatmul.mubr.bf16.gmra.mrb[40].mxu1 %v1962_v13 }
  0x93   : > { %1784 = vmatprep.mubr.msk.bf16.mxu0 %vm728_vm0, %v1963_v14  ;;  %1801 = vmatprep.mubr.msk.bf16.mxu1 %vm728_vm0, %v1963_v14 }
  0x9a   : > { %933 = vmatmul.mubr.bf16.gmra.mrb[44].mxu0 %v1965_v15  ;;  %1126 = vmatmul.mubr.bf16.gmra.mrb[44].mxu1 %v1965_v15 }
  0x9b   : > { %1785 = vmatprep.mubr.msk.bf16.mxu0 %vm728_vm0, %v1966_v16  ;;  %1802 = vmatprep.mubr.msk.bf16.mxu1 %vm728_vm0, %v1966_v16 }
  0xa2   : > { %943 = vmatmul.mubr.bf16.gmra.mrb[48].mxu0 %v1968_v17  ;;  %1136 = vmatmul.mubr.bf16.gmra.mrb[48].mxu1 %v1968_v17 }
  0xa3   : > { %1786 = vmatprep.mubr.msk.bf16.mxu0 %vm728_vm0, %v1969_v18  ;;  %1803 = vmatprep.mubr.msk.bf16.mxu1 %vm728_vm0, %v1969_v18 }
  0xaa   : > { %953 = vmatmul.mubr.bf16.gmra.mrb[52].mxu0 %v1971_v19  ;;  %1146 = vmatmul.mubr.bf16.gmra.mrb[52].mxu1 %v1971_v19 }
  0xab   : > { %1787 = vmatprep.mubr.msk.bf16.mxu0 %vm728_vm0, %v1972_v20  ;;  %1804 = vmatprep.mubr.msk.bf16.mxu1 %vm728_vm0, %v1972_v20 }
  0xb2   : > { %963 = vmatmul.mubr.bf16.gmra.mrb[56].mxu0 %v1974_v21  ;;  %1156 = vmatmul.mubr.bf16.gmra.mrb[56].mxu1 %v1974_v21 }
  0xb3   : > { %1788 = vmatprep.mubr.msk.bf16.mxu0 %vm728_vm0, %v1975_v22  ;;  %1805 = vmatprep.mubr.msk.bf16.mxu1 %vm728_vm0, %v1975_v22 }
  0xba   : > { %973 = vmatmul.mubr.bf16.gmra.mrb[60].mxu0 %v1977_v23  ;;  %1166 = vmatmul.mubr.bf16.gmra.mrb[60].mxu1 %v1977_v23 }
 0x115   : > { %v824_v39 = vpop.f32.mrb[0].mxu0  ;;  %v1017_v40 = vpop.f32.mrb[0].mxu1 }
 0x116   : > { %v825_v42 = vadd.f32 %v824_v39, %v2349_v32  ;;  %v1018_v44 = vadd.f32 %v1017_v40, %v2351_v33  ;;  %v826_v45 = vpop.f32.mrb[1].mxu0  ;;  %v1019_v46 = vpop.f32.mrb[1].mxu1 }
 0x117   : > { %v827_v49 = vadd.f32 %v826_v45, %v2356_v35  ;;  %v1020_v51 = vadd.f32 %v1019_v46, %v2358_v36  ;;  %v828_v52 = vpop.f32.mrb[2].mxu0  ;;  %v1021_v53 = vpop.f32.mrb[2].mxu1 }
 0x118   : > { %v1198_v54 = vmax.f32 %v825_v42, %v2360_v37  ;;  %v1200_v55 = vmax.f32 %v1018_v44, %v2362_v38  ;;  %v829_v56 = vadd.f32 %v828_v52, %v2349_v32  ;;  %v1022_v57 = vadd.f32 %v1021_v53, %v2351_v33  ;;  %v830_v58 = vpop.f32.mrb[3].mxu0  ;;  %v1023_v59 = vpop.f32.mrb[3].mxu1 }
 0x119   : > { %v1199_v60 = vmax.f32 %v827_v49, %v2364_v41  ;;  %v831_v62 = vadd.f32 %v830_v58, %v2356_v35  ;;  %v1024_v63 = vadd.f32 %v1023_v59, %v2358_v36  ;;  %v1201_v1 = vmax.f32 %v1020_v51, %v2370_v47 }
 0x11a   : > { %v1348_v0 = vmul.f32 %v2367_v43, %v1198_v54  ;;  %v1202_v2 = vmax.f32 %v829_v56, %v2360_v37  ;;  %v1204_v3 = vmax.f32 %v1022_v57, %v2362_v38  ;;  %v1350_v4 = vmul.f32 %v2372_v48, %v1200_v55 }
 0x11b   : > { %v1349_v5 = vmul.f32 %v2375_v50, %v1199_v60  ;;  %v1203_v6 = vmax.f32 %v831_v62, %v2364_v41  ;;  %v1205_v10 = vmax.f32 %v1024_v63, %v2370_v47  ;;  %v1351_v13 = vmul.f32 %v2383_v61, %v1201_v1 }
 0x11c   : > { %v1352_v7 = vmul.f32 %v2367_v43, %v1202_v2  ;;  %v1354_v14 = vmul.f32 %v2372_v48, %v1204_v3 }
 0x11d   : > { %v1476_v8 = vadd.f32 %v1349_v5, %v1348_v0  ;;  %v1353_v9 = vmul.f32 %v2375_v50, %v1203_v6  ;;  %v834_v11 = vpop.f32.mrb[4].mxu0  ;;  %v1027_v12 = vpop.f32.mrb[4].mxu1  ;;  %v1355_v34 = vmul.f32 %v2383_v61, %v1205_v10 }
 0x11e   : > { %v835_v15 = vadd.f32 %v834_v11, %v2349_v32  ;;  %v1028_v16 = vadd.f32 %v1027_v12, %v2351_v33  ;;  %v836_v17 = vpop.f32.mrb[5].mxu0  ;;  %v1029_v18 = vpop.f32.mrb[5].mxu1 }
 0x11f   : > { %v1508_v19 = vadd.f32 %v1476_v8, %v1350_v4  ;;  %v1477_v20 = vadd.f32 %v1353_v9, %v1352_v7  ;;  %v837_v21 = vadd.f32 %v836_v17, %v2356_v35  ;;  %v1030_v22 = vadd.f32 %v1029_v18, %v2358_v36  ;;  %v838_v23 = vpop.f32.mrb[6].mxu0  ;;  %v1031_v24 = vpop.f32.mrb[6].mxu1 }
 0x120   : > { %v1206_v25 = vmax.f32 %v835_v15, %v2360_v37  ;;  %v1208_v26 = vmax.f32 %v1028_v16, %v2362_v38  ;;  %v839_v27 = vadd.f32 %v838_v23, %v2349_v32  ;;  %v1032_v28 = vadd.f32 %v1031_v24, %v2351_v33  ;;  %v840_v29 = vpop.f32.mrb[7].mxu0  ;;  %v1033_v30 = vpop.f32.mrb[7].mxu1 }
 0x121   : > { %v1540_v31 = vadd.f32 %v1508_v19, %v1351_v13  ;;  %v1509_v39 = vadd.f32 %v1477_v20, %v1354_v14  ;;  %v1207_v40 = vmax.f32 %v837_v21, %v2364_v41  ;;  %v1209_v44 = vmax.f32 %v1030_v22, %v2370_v47 }
 0x122   : > { %v1356_v42 = vmul.f32 %v2367_v43, %v1206_v25  ;;  %v1210_v45 = vmax.f32 %v839_v27, %v2360_v37  ;;  %v1358_v49 = vmul.f32 %v2372_v48, %v1208_v26  ;;  %v841_v52 = vadd.f32 %v840_v29, %v2356_v35 }
 0x123   : > { %1572 = vst [vmem:[%s2415_s8] sm:$0xff] %v1540_v31  ;;  %v1541_v46 = vadd.f32 %v1509_v39, %v1355_v34  ;;  %v1357_v51 = vmul.f32 %v2375_v50, %v1207_v40  ;;  %v1212_v53 = vmax.f32 %v1032_v28, %v2362_v38  ;;  %v1034_v54 = vadd.f32 %v1033_v30, %v2358_v36 }
 0x124   : > { %v1360_v56 = vmul.f32 %v2367_v43, %v1210_v45  ;;  %v1211_v57 = vmax.f32 %v841_v52, %v2364_v41  ;;  %v1359_v60 = vmul.f32 %v2383_v61, %v1209_v44 }
 0x125   : > { %1573 = vst [vmem:[%s2415_s8 + $0x8] sm:$0xff] %v1541_v46  ;;  %v1478_v55 = vadd.f32 %v1357_v51, %v1356_v42  ;;  %v844_v58 = vpop.f32.mrb[8].mxu0  ;;  %v1037_v59 = vpop.f32.mrb[8].mxu1  ;;  %v1213_v62 = vmax.f32 %v1034_v54, %v2370_v47  ;;  %v1362_v9 = vmul.f32 %v2372_v48, %v1212_v53 }
 0x126   : > { %v845_v63 = vadd.f32 %v844_v58, %v2349_v32  ;;  %v1038_v0 = vadd.f32 %v1037_v59, %v2351_v33  ;;  %v846_v1 = vpop.f32.mrb[9].mxu0  ;;  %v1039_v2 = vpop.f32.mrb[9].mxu1  ;;  %v1361_v4 = vmul.f32 %v2375_v50, %v1211_v57 }
 0x127   : > { %v1510_v3 = vadd.f32 %v1478_v55, %v1358_v49  ;;  %v847_v5 = vadd.f32 %v846_v1, %v2356_v35  ;;  %v1040_v6 = vadd.f32 %v1039_v2, %v2358_v36  ;;  %v848_v7 = vpop.f32.mrb[10].mxu0  ;;  %v1041_v8 = vpop.f32.mrb[10].mxu1  ;;  %v1363_v17 = vmul.f32 %v2383_v61, %v1213_v62 }
 0x128   : > { %v1214_v10 = vmax.f32 %v845_v63, %v2360_v37  ;;  %v1216_v11 = vmax.f32 %v1038_v0, %v2362_v38  ;;  %v849_v12 = vadd.f32 %v848_v7, %v2349_v32  ;;  %v850_v13 = vpop.f32.mrb[11].mxu0  ;;  %v1043_v14 = vpop.f32.mrb[11].mxu1  ;;  %v1479_v16 = vadd.f32 %v1361_v4, %v1360_v56 }
 0x129   : > { %v1542_v15 = vadd.f32 %v1510_v3, %v1359_v60  ;;  %v1215_v18 = vmax.f32 %v847_v5, %v2364_v41  ;;  %v1217_v20 = vmax.f32 %v1040_v6, %v2370_v47  ;;  %v1042_v22 = vadd.f32 %v1041_v8, %v2351_v33 }
 0x12a   : > { %v1364_v19 = vmul.f32 %v2367_v43, %v1214_v10  ;;  %v1218_v21 = vmax.f32 %v849_v12, %v2360_v37  ;;  %v1511_v23 = vadd.f32 %v1479_v16, %v1362_v9  ;;  %v1366_v24 = vmul.f32 %v2372_v48, %v1216_v11 }
 0x12b   : > { %1574 = vst [vmem:[%s2415_s8 + $0x10] sm:$0xff] %v1542_v15  ;;  %v1365_v25 = vmul.f32 %v2375_v50, %v1215_v18  ;;  %v851_v26 = vadd.f32 %v850_v13, %v2356_v35  ;;  %v1220_v27 = vmax.f32 %v1042_v22, %v2362_v38  ;;  %v1044_v28 = vadd.f32 %v1043_v14, %v2358_v36 }
 0x12c   : > { %v1543_v29 = vadd.f32 %v1511_v23, %v1363_v17  ;;  %v1368_v31 = vmul.f32 %v2367_v43, %v1218_v21  ;;  %v1367_v42 = vmul.f32 %v2383_v61, %v1217_v20 }
 0x12d   : > { %v1480_v30 = vadd.f32 %v1365_v25, %v1364_v19  ;;  %v1219_v34 = vmax.f32 %v851_v26, %v2364_v41  ;;  %v854_v39 = vpop.f32.mrb[12].mxu0  ;;  %v1047_v40 = vpop.f32.mrb[12].mxu1  ;;  %v1221_v44 = vmax.f32 %v1044_v28, %v2370_v47  ;;  %v1370_v58 = vmul.f32 %v2372_v48, %v1220_v27 }
 0x12e   : > { %v855_v45 = vadd.f32 %v854_v39, %v2349_v32  ;;  %v1048_v46 = vadd.f32 %v1047_v40, %v2351_v33  ;;  %v856_v49 = vpop.f32.mrb[13].mxu0  ;;  %v1049_v51 = vpop.f32.mrb[13].mxu1  ;;  %1575 = vst [vmem:[%s2415_s8 + $0x18] sm:$0xff] %v1543_v29 }
 0x12f   : > { %v1512_v52 = vadd.f32 %v1480_v30, %v1366_v24  ;;  %v1369_v53 = vmul.f32 %v2375_v50, %v1219_v34  ;;  %v857_v54 = vadd.f32 %v856_v49, %v2356_v35  ;;  %v1050_v55 = vadd.f32 %v1049_v51, %v2358_v36  ;;  %v858_v56 = vpop.f32.mrb[14].mxu0  ;;  %v1051_v57 = vpop.f32.mrb[14].mxu1 }
 0x130   : > { %v1222_v59 = vmax.f32 %v855_v45, %v2360_v37  ;;  %v1224_v60 = vmax.f32 %v1048_v46, %v2362_v38  ;;  %v859_v62 = vadd.f32 %v858_v56, %v2349_v32  ;;  %v860_v63 = vpop.f32.mrb[15].mxu0  ;;  %v1053_v0 = vpop.f32.mrb[15].mxu1  ;;  %v1371_v3 = vmul.f32 %v2383_v61, %v1221_v44 }
 0x131   : > { %v1544_v1 = vadd.f32 %v1512_v52, %v1367_v42  ;;  %v1481_v2 = vadd.f32 %v1369_v53, %v1368_v31  ;;  %v1223_v4 = vmax.f32 %v857_v54, %v2364_v41  ;;  %v1225_v6 = vmax.f32 %v1050_v55, %v2370_v47 }
 0x132   : > { %v1372_v5 = vmul.f32 %v2367_v43, %v1222_v59  ;;  %v1226_v7 = vmax.f32 %v859_v62, %v2360_v37  ;;  %v1052_v8 = vadd.f32 %v1051_v57, %v2351_v33  ;;  %v1374_v10 = vmul.f32 %v2372_v48, %v1224_v60 }
 0x133   : > { %1576 = vst [vmem:[%s2415_s8 + $0x20] sm:$0xff] %v1544_v1  ;;  %v1513_v9 = vadd.f32 %v1481_v2, %v1370_v58  ;;  %v1373_v11 = vmul.f32 %v2375_v50, %v1223_v4  ;;  %v861_v12 = vadd.f32 %v860_v63, %v2356_v35  ;;  %v1054_v14 = vadd.f32 %v1053_v0, %v2358_v36 }
 0x134   : > { %v1228_v13 = vmax.f32 %v1052_v8, %v2362_v38  ;;  %v1376_v17 = vmul.f32 %v2367_v43, %v1226_v7  ;;  %v1375_v21 = vmul.f32 %v2383_v61, %v1225_v6 }
 0x135   : > { %v1545_v15 = vadd.f32 %v1513_v9, %v1371_v3  ;;  %v1482_v16 = vadd.f32 %v1373_v11, %v1372_v5  ;;  %v1227_v18 = vmax.f32 %v861_v12, %v2364_v41  ;;  %v864_v19 = vpop.f32.mrb[16].mxu0  ;;  %v1057_v20 = vpop.f32.mrb[16].mxu1  ;;  %v1229_v22 = vmax.f32 %v1054_v14, %v2370_v47 }
 0x136   : > { %v865_v23 = vadd.f32 %v864_v19, %v2349_v32  ;;  %v1058_v24 = vadd.f32 %v1057_v20, %v2351_v33  ;;  %v866_v25 = vpop.f32.mrb[17].mxu0  ;;  %v1059_v26 = vpop.f32.mrb[17].mxu1  ;;  %v1378_v39 = vmul.f32 %v2372_v48, %v1228_v13 }
 0x137   : > { %1577 = vst [vmem:[%s2415_s8 + $0x28] sm:$0xff] %v1545_v15  ;;  %v1514_v27 = vadd.f32 %v1482_v16, %v1374_v10  ;;  %v1377_v28 = vmul.f32 %v2375_v50, %v1227_v18  ;;  %v867_v29 = vadd.f32 %v866_v25, %v2356_v35  ;;  %v1060_v30 = vadd.f32 %v1059_v26, %v2358_v36  ;;  %v868_v31 = vpop.f32.mrb[18].mxu0  ;;  %v1061_v34 = vpop.f32.mrb[18].mxu1 }
 0x138   : > { %v1230_v40 = vmax.f32 %v865_v23, %v2360_v37  ;;  %v1232_v42 = vmax.f32 %v1058_v24, %v2362_v38  ;;  %v869_v44 = vadd.f32 %v868_v31, %v2349_v32  ;;  %v870_v45 = vpop.f32.mrb[19].mxu0  ;;  %v1063_v46 = vpop.f32.mrb[19].mxu1  ;;  %v1379_v52 = vmul.f32 %v2383_v61, %v1229_v22 }
 0x139   : > { %v1546_v49 = vadd.f32 %v1514_v27, %v1375_v21  ;;  %v1483_v51 = vadd.f32 %v1377_v28, %v1376_v17  ;;  %v1231_v53 = vmax.f32 %v867_v29, %v2364_v41  ;;  %v1233_v55 = vmax.f32 %v1060_v30, %v2370_v47 }
 0x13a   : > { %v1380_v54 = vmul.f32 %v2367_v43, %v1230_v40  ;;  %v1234_v56 = vmax.f32 %v869_v44, %v2360_v37  ;;  %v1062_v57 = vadd.f32 %v1061_v34, %v2351_v33  ;;  %v1382_v59 = vmul.f32 %v2372_v48, %v1232_v42 }
 0x13b   : > { %1578 = vst [vmem:[%s2415_s8 + $0x30] sm:$0xff] %v1546_v49  ;;  %v1515_v58 = vadd.f32 %v1483_v51, %v1378_v39  ;;  %v1381_v60 = vmul.f32 %v2375_v50, %v1231_v53  ;;  %v871_v62 = vadd.f32 %v870_v45, %v2356_v35  ;;  %v1064_v0 = vadd.f32 %v1063_v46, %v2358_v36 }
 0x13c   : > { %v1236_v63 = vmax.f32 %v1062_v57, %v2362_v38  ;;  %v1384_v3 = vmul.f32 %v2367_v43, %v1234_v56  ;;  %v1383_v7 = vmul.f32 %v2383_v61, %v1233_v55 }
 0x13d   : > { %v1547_v1 = vadd.f32 %v1515_v58, %v1379_v52  ;;  %v1484_v2 = vadd.f32 %v1381_v60, %v1380_v54  ;;  %v1235_v4 = vmax.f32 %v871_v62, %v2364_v41  ;;  %v874_v5 = vpop.f32.mrb[20].mxu0  ;;  %v1067_v6 = vpop.f32.mrb[20].mxu1  ;;  %v1237_v8 = vmax.f32 %v1064_v0, %v2370_v47 }
 0x13e   : > { %v875_v9 = vadd.f32 %v874_v5, %v2349_v32  ;;  %v1068_v10 = vadd.f32 %v1067_v6, %v2351_v33  ;;  %v876_v11 = vpop.f32.mrb[21].mxu0  ;;  %v1069_v12 = vpop.f32.mrb[21].mxu1  ;;  %v1386_v19 = vmul.f32 %v2372_v48, %v1236_v63 }
 0x13f   : > { %1579 = vst [vmem:[%s2415_s8 + $0x38] sm:$0xff] %v1547_v1  ;;  %v1516_v13 = vadd.f32 %v1484_v2, %v1382_v59  ;;  %v1385_v14 = vmul.f32 %v2375_v50, %v1235_v4  ;;  %v877_v15 = vadd.f32 %v876_v11, %v2356_v35  ;;  %v1070_v16 = vadd.f32 %v1069_v12, %v2358_v36  ;;  %v878_v17 = vpop.f32.mrb[22].mxu0  ;;  %v1071_v18 = vpop.f32.mrb[22].mxu1 }
 0x140   : > { %v1238_v20 = vmax.f32 %v875_v9, %v2360_v37  ;;  %v1240_v21 = vmax.f32 %v1068_v10, %v2362_v38  ;;  %v879_v22 = vadd.f32 %v878_v17, %v2349_v32  ;;  %v880_v23 = vpop.f32.mrb[23].mxu0  ;;  %v1073_v24 = vpop.f32.mrb[23].mxu1  ;;  %v1387_v27 = vmul.f32 %v2383_v61, %v1237_v8 }
 0x141   : > { %v1548_v25 = vadd.f32 %v1516_v13, %v1383_v7  ;;  %v1485_v26 = vadd.f32 %v1385_v14, %v1384_v3  ;;  %v1239_v28 = vmax.f32 %v877_v15, %v2364_v41  ;;  %v1241_v30 = vmax.f32 %v1070_v16, %v2370_v47 }
 0x142   : > { %v1388_v29 = vmul.f32 %v2367_v43, %v1238_v20  ;;  %v1242_v31 = vmax.f32 %v879_v22, %v2360_v37  ;;  %v1072_v34 = vadd.f32 %v1071_v18, %v2351_v33  ;;  %v1390_v40 = vmul.f32 %v2372_v48, %v1240_v21 }
 0x143   : > { %1580 = vst [vmem:[%s2415_s8 + $0x40] sm:$0xff] %v1548_v25  ;;  %v1517_v39 = vadd.f32 %v1485_v26, %v1386_v19  ;;  %v1389_v42 = vmul.f32 %v2375_v50, %v1239_v28  ;;  %v881_v44 = vadd.f32 %v880_v23, %v2356_v35  ;;  %v1074_v46 = vadd.f32 %v1073_v24, %v2358_v36 }
 0x144   : > { %v1244_v45 = vmax.f32 %v1072_v34, %v2362_v38  ;;  %v1392_v52 = vmul.f32 %v2367_v43, %v1242_v31  ;;  %v1391_v56 = vmul.f32 %v2383_v61, %v1241_v30 }
 0x145   : > { %v1549_v49 = vadd.f32 %v1517_v39, %v1387_v27  ;;  %v1486_v51 = vadd.f32 %v1389_v42, %v1388_v29  ;;  %v1243_v53 = vmax.f32 %v881_v44, %v2364_v41  ;;  %v884_v54 = vpop.f32.mrb[24].mxu0  ;;  %v1077_v55 = vpop.f32.mrb[24].mxu1  ;;  %v1245_v57 = vmax.f32 %v1074_v46, %v2370_v47 }
 0x146   : > { %v885_v58 = vadd.f32 %v884_v54, %v2349_v32  ;;  %v1078_v59 = vadd.f32 %v1077_v55, %v2351_v33  ;;  %v886_v60 = vpop.f32.mrb[25].mxu0  ;;  %v1079_v62 = vpop.f32.mrb[25].mxu1  ;;  %v1394_v5 = vmul.f32 %v2372_v48, %v1244_v45 }
 0x147   : > { %1581 = vst [vmem:[%s2415_s8 + $0x48] sm:$0xff] %v1549_v49  ;;  %v1518_v63 = vadd.f32 %v1486_v51, %v1390_v40  ;;  %v1393_v0 = vmul.f32 %v2375_v50, %v1243_v53  ;;  %v887_v1 = vadd.f32 %v886_v60, %v2356_v35  ;;  %v1080_v2 = vadd.f32 %v1079_v62, %v2358_v36  ;;  %v888_v3 = vpop.f32.mrb[26].mxu0  ;;  %v1081_v4 = vpop.f32.mrb[26].mxu1 }
 0x148   : > { %v1246_v6 = vmax.f32 %v885_v58, %v2360_v37  ;;  %v1248_v7 = vmax.f32 %v1078_v59, %v2362_v38  ;;  %v889_v8 = vadd.f32 %v888_v3, %v2349_v32  ;;  %v890_v9 = vpop.f32.mrb[27].mxu0  ;;  %v1083_v10 = vpop.f32.mrb[27].mxu1  ;;  %v1395_v13 = vmul.f32 %v2383_v61, %v1245_v57 }
 0x149   : > { %v1550_v11 = vadd.f32 %v1518_v63, %v1391_v56  ;;  %v1487_v12 = vadd.f32 %v1393_v0, %v1392_v52  ;;  %v1247_v14 = vmax.f32 %v887_v1, %v2364_v41  ;;  %v1249_v16 = vmax.f32 %v1080_v2, %v2370_v47 }
 0x14a   : > { %v1396_v15 = vmul.f32 %v2367_v43, %v1246_v6  ;;  %v1250_v17 = vmax.f32 %v889_v8, %v2360_v37  ;;  %v1082_v18 = vadd.f32 %v1081_v4, %v2351_v33  ;;  %v1398_v20 = vmul.f32 %v2372_v48, %v1248_v7 }
 0x14b   : > { %1582 = vst [vmem:[%s2415_s8 + $0x50] sm:$0xff] %v1550_v11  ;;  %v1519_v19 = vadd.f32 %v1487_v12, %v1394_v5  ;;  %v1397_v21 = vmul.f32 %v2375_v50, %v1247_v14  ;;  %v891_v22 = vadd.f32 %v890_v9, %v2356_v35  ;;  %v1084_v24 = vadd.f32 %v1083_v10, %v2358_v36 }
 0x14c   : > { %v1252_v23 = vmax.f32 %v1082_v18, %v2362_v38  ;;  %v1400_v27 = vmul.f32 %v2367_v43, %v1250_v17  ;;  %v1399_v31 = vmul.f32 %v2383_v61, %v1249_v16 }
 0x14d   : > { %v1551_v25 = vadd.f32 %v1519_v19, %v1395_v13  ;;  %v1488_v26 = vadd.f32 %v1397_v21, %v1396_v15  ;;  %v1251_v28 = vmax.f32 %v891_v22, %v2364_v41  ;;  %v894_v29 = vpop.f32.mrb[28].mxu0  ;;  %v1087_v30 = vpop.f32.mrb[28].mxu1  ;;  %v1253_v34 = vmax.f32 %v1084_v24, %v2370_v47 }
 0x14e   : > { %v895_v39 = vadd.f32 %v894_v29, %v2349_v32  ;;  %v1088_v40 = vadd.f32 %v1087_v30, %v2351_v33  ;;  %v896_v42 = vpop.f32.mrb[29].mxu0  ;;  %v1089_v44 = vpop.f32.mrb[29].mxu1  ;;  %v1402_v54 = vmul.f32 %v2372_v48, %v1252_v23 }
 0x14f   : > { %1583 = vst [vmem:[%s2415_s8 + $0x58] sm:$0xff] %v1551_v25  ;;  %v1520_v45 = vadd.f32 %v1488_v26, %v1398_v20  ;;  %v1401_v46 = vmul.f32 %v2375_v50, %v1251_v28  ;;  %v897_v49 = vadd.f32 %v896_v42, %v2356_v35  ;;  %v1090_v51 = vadd.f32 %v1089_v44, %v2358_v36  ;;  %v898_v52 = vpop.f32.mrb[30].mxu0  ;;  %v1091_v53 = vpop.f32.mrb[30].mxu1 }
 0x150   : > { %v1254_v55 = vmax.f32 %v895_v39, %v2360_v37  ;;  %v1256_v56 = vmax.f32 %v1088_v40, %v2362_v38  ;;  %v899_v57 = vadd.f32 %v898_v52, %v2349_v32  ;;  %v900_v58 = vpop.f32.mrb[31].mxu0  ;;  %v1093_v59 = vpop.f32.mrb[31].mxu1  ;;  %v1403_v63 = vmul.f32 %v2383_v61, %v1253_v34 }
 0x151   : > { %v1552_v60 = vadd.f32 %v1520_v45, %v1399_v31  ;;  %v1489_v62 = vadd.f32 %v1401_v46, %v1400_v27  ;;  %v1255_v0 = vmax.f32 %v897_v49, %v2364_v41  ;;  %v1257_v2 = vmax.f32 %v1090_v51, %v2370_v47 }
 0x152   : > { %v1404_v1 = vmul.f32 %v2367_v43, %v1254_v55  ;;  %v1258_v3 = vmax.f32 %v899_v57, %v2360_v37  ;;  %v1092_v4 = vadd.f32 %v1091_v53, %v2351_v33  ;;  %v1406_v6 = vmul.f32 %v2372_v48, %v1256_v56 }
 0x153   : > { %1584 = vst [vmem:[%s2415_s8 + $0x60] sm:$0xff] %v1552_v60  ;;  %v1521_v5 = vadd.f32 %v1489_v62, %v1402_v54  ;;  %v1405_v7 = vmul.f32 %v2375_v50, %v1255_v0  ;;  %v901_v8 = vadd.f32 %v900_v58, %v2356_v35  ;;  %v1094_v10 = vadd.f32 %v1093_v59, %v2358_v36 }
 0x154   : > { %v1260_v9 = vmax.f32 %v1092_v4, %v2362_v38  ;;  %v1408_v13 = vmul.f32 %v2367_v43, %v1258_v3  ;;  %v1407_v17 = vmul.f32 %v2383_v61, %v1257_v2 }
 0x155   : > { %v1553_v11 = vadd.f32 %v1521_v5, %v1403_v63  ;;  %v1490_v12 = vadd.f32 %v1405_v7, %v1404_v1  ;;  %v1259_v14 = vmax.f32 %v901_v8, %v2364_v41  ;;  %v904_v15 = vpop.f32.mrb[32].mxu0  ;;  %v1097_v16 = vpop.f32.mrb[32].mxu1  ;;  %v1261_v18 = vmax.f32 %v1094_v10, %v2370_v47 }
 0x156   : > { %v905_v19 = vadd.f32 %v904_v15, %v2349_v32  ;;  %v1098_v20 = vadd.f32 %v1097_v16, %v2351_v33  ;;  %v906_v21 = vpop.f32.mrb[33].mxu0  ;;  %v1099_v22 = vpop.f32.mrb[33].mxu1  ;;  %v1410_v29 = vmul.f32 %v2372_v48, %v1260_v9 }
 0x157   : > { %1585 = vst [vmem:[%s2415_s8 + $0x68] sm:$0xff] %v1553_v11  ;;  %v1522_v23 = vadd.f32 %v1490_v12, %v1406_v6  ;;  %v1409_v24 = vmul.f32 %v2375_v50, %v1259_v14  ;;  %v907_v25 = vadd.f32 %v906_v21, %v2356_v35  ;;  %v1100_v26 = vadd.f32 %v1099_v22, %v2358_v36  ;;  %v908_v27 = vpop.f32.mrb[34].mxu0  ;;  %v1101_v28 = vpop.f32.mrb[34].mxu1 }
 0x158   : > { %v1262_v30 = vmax.f32 %v905_v19, %v2360_v37  ;;  %v1264_v31 = vmax.f32 %v1098_v20, %v2362_v38  ;;  %v909_v34 = vadd.f32 %v908_v27, %v2349_v32  ;;  %v910_v39 = vpop.f32.mrb[35].mxu0  ;;  %v1103_v40 = vpop.f32.mrb[35].mxu1  ;;  %v1411_v45 = vmul.f32 %v2383_v61, %v1261_v18 }
 0x159   : > { %v1554_v42 = vadd.f32 %v1522_v23, %v1407_v17  ;;  %v1491_v44 = vadd.f32 %v1409_v24, %v1408_v13  ;;  %v1263_v46 = vmax.f32 %v907_v25, %v2364_v41  ;;  %v1265_v51 = vmax.f32 %v1100_v26, %v2370_v47 }
 0x15a   : > { %v1412_v49 = vmul.f32 %v2367_v43, %v1262_v30  ;;  %v1266_v52 = vmax.f32 %v909_v34, %v2360_v37  ;;  %v1102_v53 = vadd.f32 %v1101_v28, %v2351_v33  ;;  %v1414_v55 = vmul.f32 %v2372_v48, %v1264_v31 }
 0x15b   : > { %1586 = vst [vmem:[%s2415_s8 + $0x70] sm:$0xff] %v1554_v42  ;;  %v1523_v54 = vadd.f32 %v1491_v44, %v1410_v29  ;;  %v1413_v56 = vmul.f32 %v2375_v50, %v1263_v46  ;;  %v911_v57 = vadd.f32 %v910_v39, %v2356_v35  ;;  %v1104_v59 = vadd.f32 %v1103_v40, %v2358_v36 }
 0x15c   : > { %v1268_v58 = vmax.f32 %v1102_v53, %v2362_v38  ;;  %v1416_v63 = vmul.f32 %v2367_v43, %v1266_v52  ;;  %v1415_v3 = vmul.f32 %v2383_v61, %v1265_v51 }
 0x15d   : > { %v1555_v60 = vadd.f32 %v1523_v54, %v1411_v45  ;;  %v1492_v62 = vadd.f32 %v1413_v56, %v1412_v49  ;;  %v1267_v0 = vmax.f32 %v911_v57, %v2364_v41  ;;  %v914_v1 = vpop.f32.mrb[36].mxu0  ;;  %v1107_v2 = vpop.f32.mrb[36].mxu1  ;;  %v1269_v4 = vmax.f32 %v1104_v59, %v2370_v47 }
 0x15e   : > { %v915_v5 = vadd.f32 %v914_v1, %v2349_v32  ;;  %v1108_v6 = vadd.f32 %v1107_v2, %v2351_v33  ;;  %v916_v7 = vpop.f32.mrb[37].mxu0  ;;  %v1109_v8 = vpop.f32.mrb[37].mxu1  ;;  %v1418_v15 = vmul.f32 %v2372_v48, %v1268_v58 }
 0x15f   : > { %1587 = vst [vmem:[%s2415_s8 + $0x78] sm:$0xff] %v1555_v60  ;;  %v1524_v9 = vadd.f32 %v1492_v62, %v1414_v55  ;;  %v1417_v10 = vmul.f32 %v2375_v50, %v1267_v0  ;;  %v917_v11 = vadd.f32 %v916_v7, %v2356_v35  ;;  %v1110_v12 = vadd.f32 %v1109_v8, %v2358_v36  ;;  %v918_v13 = vpop.f32.mrb[38].mxu0  ;;  %v1111_v14 = vpop.f32.mrb[38].mxu1 }
 0x160   : > { %v1270_v16 = vmax.f32 %v915_v5, %v2360_v37  ;;  %v1272_v17 = vmax.f32 %v1108_v6, %v2362_v38  ;;  %v919_v18 = vadd.f32 %v918_v13, %v2349_v32  ;;  %v920_v19 = vpop.f32.mrb[39].mxu0  ;;  %v1113_v20 = vpop.f32.mrb[39].mxu1  ;;  %v1419_v23 = vmul.f32 %v2383_v61, %v1269_v4 }
 0x161   : > { %v1556_v21 = vadd.f32 %v1524_v9, %v1415_v3  ;;  %v1493_v22 = vadd.f32 %v1417_v10, %v1416_v63  ;;  %v1271_v24 = vmax.f32 %v917_v11, %v2364_v41  ;;  %v1273_v26 = vmax.f32 %v1110_v12, %v2370_v47 }
 0x162   : > { %v1420_v25 = vmul.f32 %v2367_v43, %v1270_v16  ;;  %v1274_v27 = vmax.f32 %v919_v18, %v2360_v37  ;;  %v1112_v28 = vadd.f32 %v1111_v14, %v2351_v33  ;;  %v1422_v30 = vmul.f32 %v2372_v48, %v1272_v17 }
 0x163   : > { %1588 = vst [vmem:[%s2415_s8 + $0x80] sm:$0xff] %v1556_v21  ;;  %v1525_v29 = vadd.f32 %v1493_v22, %v1418_v15  ;;  %v1421_v31 = vmul.f32 %v2375_v50, %v1271_v24  ;;  %v921_v34 = vadd.f32 %v920_v19, %v2356_v35  ;;  %v1114_v40 = vadd.f32 %v1113_v20, %v2358_v36 }
 0x164   : > { %v1276_v39 = vmax.f32 %v1112_v28, %v2362_v38  ;;  %v1424_v45 = vmul.f32 %v2367_v43, %v1274_v27  ;;  %v1423_v52 = vmul.f32 %v2383_v61, %v1273_v26 }
 0x165   : > { %v1557_v42 = vadd.f32 %v1525_v29, %v1419_v23  ;;  %v1494_v44 = vadd.f32 %v1421_v31, %v1420_v25  ;;  %v1275_v46 = vmax.f32 %v921_v34, %v2364_v41  ;;  %v924_v49 = vpop.f32.mrb[40].mxu0  ;;  %v1117_v51 = vpop.f32.mrb[40].mxu1  ;;  %v1277_v53 = vmax.f32 %v1114_v40, %v2370_v47 }
 0x166   : > { %v925_v54 = vadd.f32 %v924_v49, %v2349_v32  ;;  %v1118_v55 = vadd.f32 %v1117_v51, %v2351_v33  ;;  %v926_v56 = vpop.f32.mrb[41].mxu0  ;;  %v1119_v57 = vpop.f32.mrb[41].mxu1  ;;  %v1426_v1 = vmul.f32 %v2372_v48, %v1276_v39 }
 0x167   : > { %1589 = vst [vmem:[%s2415_s8 + $0x88] sm:$0xff] %v1557_v42  ;;  %v1526_v58 = vadd.f32 %v1494_v44, %v1422_v30  ;;  %v1425_v59 = vmul.f32 %v2375_v50, %v1275_v46  ;;  %v927_v60 = vadd.f32 %v926_v56, %v2356_v35  ;;  %v1120_v62 = vadd.f32 %v1119_v57, %v2358_v36  ;;  %v928_v63 = vpop.f32.mrb[42].mxu0  ;;  %v1121_v0 = vpop.f32.mrb[42].mxu1 }
 0x168   : > { %v1278_v2 = vmax.f32 %v925_v54, %v2360_v37  ;;  %v1280_v3 = vmax.f32 %v1118_v55, %v2362_v38  ;;  %v929_v4 = vadd.f32 %v928_v63, %v2349_v32  ;;  %v930_v5 = vpop.f32.mrb[43].mxu0  ;;  %v1123_v6 = vpop.f32.mrb[43].mxu1  ;;  %v1427_v9 = vmul.f32 %v2383_v61, %v1277_v53 }
 0x169   : > { %v1558_v7 = vadd.f32 %v1526_v58, %v1423_v52  ;;  %v1495_v8 = vadd.f32 %v1425_v59, %v1424_v45  ;;  %v1279_v10 = vmax.f32 %v927_v60, %v2364_v41  ;;  %v1281_v12 = vmax.f32 %v1120_v62, %v2370_v47 }
 0x16a   : > { %v1428_v11 = vmul.f32 %v2367_v43, %v1278_v2  ;;  %v1282_v13 = vmax.f32 %v929_v4, %v2360_v37  ;;  %v1122_v14 = vadd.f32 %v1121_v0, %v2351_v33  ;;  %v1430_v16 = vmul.f32 %v2372_v48, %v1280_v3 }
 0x16b   : > { %1590 = vst [vmem:[%s2415_s8 + $0x90] sm:$0xff] %v1558_v7  ;;  %v1527_v15 = vadd.f32 %v1495_v8, %v1426_v1  ;;  %v1429_v17 = vmul.f32 %v2375_v50, %v1279_v10  ;;  %v931_v18 = vadd.f32 %v930_v5, %v2356_v35  ;;  %v1124_v20 = vadd.f32 %v1123_v6, %v2358_v36 }
 0x16c   : > { %v1284_v19 = vmax.f32 %v1122_v14, %v2362_v38  ;;  %v1432_v23 = vmul.f32 %v2367_v43, %v1282_v13  ;;  %v1431_v27 = vmul.f32 %v2383_v61, %v1281_v12 }
 0x16d   : > { %v1559_v21 = vadd.f32 %v1527_v15, %v1427_v9  ;;  %v1496_v22 = vadd.f32 %v1429_v17, %v1428_v11  ;;  %v1283_v24 = vmax.f32 %v931_v18, %v2364_v41  ;;  %v934_v25 = vpop.f32.mrb[44].mxu0  ;;  %v1127_v26 = vpop.f32.mrb[44].mxu1  ;;  %v1285_v28 = vmax.f32 %v1124_v20, %v2370_v47 }
 0x16e   : > { %v935_v29 = vadd.f32 %v934_v25, %v2349_v32  ;;  %v1128_v30 = vadd.f32 %v1127_v26, %v2351_v33  ;;  %v936_v31 = vpop.f32.mrb[45].mxu0  ;;  %v1129_v34 = vpop.f32.mrb[45].mxu1  ;;  %v1434_v49 = vmul.f32 %v2372_v48, %v1284_v19 }
 0x16f   : > { %1591 = vst [vmem:[%s2415_s8 + $0x98] sm:$0xff] %v1559_v21  ;;  %v1528_v39 = vadd.f32 %v1496_v22, %v1430_v16  ;;  %v1433_v40 = vmul.f32 %v2375_v50, %v1283_v24  ;;  %v937_v42 = vadd.f32 %v936_v31, %v2356_v35  ;;  %v1130_v44 = vadd.f32 %v1129_v34, %v2358_v36  ;;  %v938_v45 = vpop.f32.mrb[46].mxu0  ;;  %v1131_v46 = vpop.f32.mrb[46].mxu1 }
 0x170   : > { %v1286_v51 = vmax.f32 %v935_v29, %v2360_v37  ;;  %v1288_v52 = vmax.f32 %v1128_v30, %v2362_v38  ;;  %v939_v53 = vadd.f32 %v938_v45, %v2349_v32  ;;  %v940_v54 = vpop.f32.mrb[47].mxu0  ;;  %v1133_v55 = vpop.f32.mrb[47].mxu1  ;;  %v1435_v58 = vmul.f32 %v2383_v61, %v1285_v28 }
 0x171   : > { %v1560_v56 = vadd.f32 %v1528_v39, %v1431_v27  ;;  %v1497_v57 = vadd.f32 %v1433_v40, %v1432_v23  ;;  %v1287_v59 = vmax.f32 %v937_v42, %v2364_v41  ;;  %v1289_v62 = vmax.f32 %v1130_v44, %v2370_v47 }
 0x172   : > { %v1436_v60 = vmul.f32 %v2367_v43, %v1286_v51  ;;  %v1290_v63 = vmax.f32 %v939_v53, %v2360_v37  ;;  %v1132_v0 = vadd.f32 %v1131_v46, %v2351_v33  ;;  %v1438_v2 = vmul.f32 %v2372_v48, %v1288_v52 }
 0x173   : > { %1592 = vst [vmem:[%s2415_s8 + $0xa0] sm:$0xff] %v1560_v56  ;;  %v1529_v1 = vadd.f32 %v1497_v57, %v1434_v49  ;;  %v1437_v3 = vmul.f32 %v2375_v50, %v1287_v59  ;;  %v941_v4 = vadd.f32 %v940_v54, %v2356_v35  ;;  %v1134_v6 = vadd.f32 %v1133_v55, %v2358_v36 }
 0x174   : > { %v1292_v5 = vmax.f32 %v1132_v0, %v2362_v38  ;;  %v1440_v9 = vmul.f32 %v2367_v43, %v1290_v63  ;;  %v1439_v13 = vmul.f32 %v2383_v61, %v1289_v62 }
 0x175   : > { %v1561_v7 = vadd.f32 %v1529_v1, %v1435_v58  ;;  %v1498_v8 = vadd.f32 %v1437_v3, %v1436_v60  ;;  %v1291_v10 = vmax.f32 %v941_v4, %v2364_v41  ;;  %v944_v11 = vpop.f32.mrb[48].mxu0  ;;  %v1137_v12 = vpop.f32.mrb[48].mxu1  ;;  %v1293_v14 = vmax.f32 %v1134_v6, %v2370_v47 }
 0x176   : > { %v945_v15 = vadd.f32 %v944_v11, %v2349_v32  ;;  %v1138_v16 = vadd.f32 %v1137_v12, %v2351_v33  ;;  %v946_v17 = vpop.f32.mrb[49].mxu0  ;;  %v1139_v18 = vpop.f32.mrb[49].mxu1  ;;  %v1442_v25 = vmul.f32 %v2372_v48, %v1292_v5 }
 0x177   : > { %1593 = vst [vmem:[%s2415_s8 + $0xa8] sm:$0xff] %v1561_v7  ;;  %v1530_v19 = vadd.f32 %v1498_v8, %v1438_v2  ;;  %v1441_v20 = vmul.f32 %v2375_v50, %v1291_v10  ;;  %v947_v21 = vadd.f32 %v946_v17, %v2356_v35  ;;  %v1140_v22 = vadd.f32 %v1139_v18, %v2358_v36  ;;  %v948_v23 = vpop.f32.mrb[50].mxu0  ;;  %v1141_v24 = vpop.f32.mrb[50].mxu1 }
 0x178   : > { %v1294_v26 = vmax.f32 %v945_v15, %v2360_v37  ;;  %v1296_v27 = vmax.f32 %v1138_v16, %v2362_v38  ;;  %v949_v28 = vadd.f32 %v948_v23, %v2349_v32  ;;  %v950_v29 = vpop.f32.mrb[51].mxu0  ;;  %v1143_v30 = vpop.f32.mrb[51].mxu1  ;;  %v1443_v39 = vmul.f32 %v2383_v61, %v1293_v14 }
 0x179   : > { %v1562_v31 = vadd.f32 %v1530_v19, %v1439_v13  ;;  %v1499_v34 = vadd.f32 %v1441_v20, %v1440_v9  ;;  %v1295_v40 = vmax.f32 %v947_v21, %v2364_v41  ;;  %v1297_v44 = vmax.f32 %v1140_v22, %v2370_v47 }
 0x17a   : > { %v1444_v42 = vmul.f32 %v2367_v43, %v1294_v26  ;;  %v1298_v45 = vmax.f32 %v949_v28, %v2360_v37  ;;  %v1142_v46 = vadd.f32 %v1141_v24, %v2351_v33  ;;  %v1446_v51 = vmul.f32 %v2372_v48, %v1296_v27 }
 0x17b   : > { %1594 = vst [vmem:[%s2415_s8 + $0xb0] sm:$0xff] %v1562_v31  ;;  %v1531_v49 = vadd.f32 %v1499_v34, %v1442_v25  ;;  %v1445_v52 = vmul.f32 %v2375_v50, %v1295_v40  ;;  %v951_v53 = vadd.f32 %v950_v29, %v2356_v35  ;;  %v1144_v55 = vadd.f32 %v1143_v30, %v2358_v36 }
 0x17c   : > { %v1300_v54 = vmax.f32 %v1142_v46, %v2362_v38  ;;  %v1448_v58 = vmul.f32 %v2367_v43, %v1298_v45  ;;  %v1447_v63 = vmul.f32 %v2383_v61, %v1297_v44 }
 0x17d   : > { %v1563_v56 = vadd.f32 %v1531_v49, %v1443_v39  ;;  %v1500_v57 = vadd.f32 %v1445_v52, %v1444_v42  ;;  %v1299_v59 = vmax.f32 %v951_v53, %v2364_v41  ;;  %v954_v60 = vpop.f32.mrb[52].mxu0  ;;  %v1147_v62 = vpop.f32.mrb[52].mxu1  ;;  %v1301_v0 = vmax.f32 %v1144_v55, %v2370_v47 }
 0x17e   : > { %v955_v1 = vadd.f32 %v954_v60, %v2349_v32  ;;  %v1148_v2 = vadd.f32 %v1147_v62, %v2351_v33  ;;  %v956_v3 = vpop.f32.mrb[53].mxu0  ;;  %v1149_v4 = vpop.f32.mrb[53].mxu1  ;;  %v1450_v11 = vmul.f32 %v2372_v48, %v1300_v54 }
 0x17f   : > { %1595 = vst [vmem:[%s2415_s8 + $0xb8] sm:$0xff] %v1563_v56  ;;  %v1532_v5 = vadd.f32 %v1500_v57, %v1446_v51  ;;  %v1449_v6 = vmul.f32 %v2375_v50, %v1299_v59  ;;  %v957_v7 = vadd.f32 %v956_v3, %v2356_v35  ;;  %v1150_v8 = vadd.f32 %v1149_v4, %v2358_v36  ;;  %v958_v9 = vpop.f32.mrb[54].mxu0  ;;  %v1151_v10 = vpop.f32.mrb[54].mxu1 }
 0x180   : > { %v1302_v12 = vmax.f32 %v955_v1, %v2360_v37  ;;  %v1304_v13 = vmax.f32 %v1148_v2, %v2362_v38  ;;  %v959_v14 = vadd.f32 %v958_v9, %v2349_v32  ;;  %v960_v15 = vpop.f32.mrb[55].mxu0  ;;  %v1153_v16 = vpop.f32.mrb[55].mxu1  ;;  %v1451_v19 = vmul.f32 %v2383_v61, %v1301_v0 }
 0x181   : > { %v1564_v17 = vadd.f32 %v1532_v5, %v1447_v63  ;;  %v1501_v18 = vadd.f32 %v1449_v6, %v1448_v58  ;;  %v1303_v20 = vmax.f32 %v957_v7, %v2364_v41  ;;  %v1305_v22 = vmax.f32 %v1150_v8, %v2370_v47 }
 0x182   : > { %v1452_v21 = vmul.f32 %v2367_v43, %v1302_v12  ;;  %v1306_v23 = vmax.f32 %v959_v14, %v2360_v37  ;;  %v1152_v24 = vadd.f32 %v1151_v10, %v2351_v33  ;;  %v1454_v26 = vmul.f32 %v2372_v48, %v1304_v13 }
 0x183   : > { %1596 = vst [vmem:[%s2415_s8 + $0xc0] sm:$0xff] %v1564_v17  ;;  %v1533_v25 = vadd.f32 %v1501_v18, %v1450_v11  ;;  %v1453_v27 = vmul.f32 %v2375_v50, %v1303_v20  ;;  %v961_v28 = vadd.f32 %v960_v15, %v2356_v35  ;;  %v1154_v30 = vadd.f32 %v1153_v16, %v2358_v36 }
 0x184   : > { %v1308_v29 = vmax.f32 %v1152_v24, %v2362_v38  ;;  %v1456_v39 = vmul.f32 %v2367_v43, %v1306_v23  ;;  %v1455_v45 = vmul.f32 %v2383_v61, %v1305_v22 }
 0x185   : > { %v1565_v31 = vadd.f32 %v1533_v25, %v1451_v19  ;;  %v1502_v34 = vadd.f32 %v1453_v27, %v1452_v21  ;;  %v1307_v40 = vmax.f32 %v961_v28, %v2364_v41  ;;  %v964_v42 = vpop.f32.mrb[56].mxu0  ;;  %v1157_v44 = vpop.f32.mrb[56].mxu1  ;;  %v1309_v46 = vmax.f32 %v1154_v30, %v2370_v47 }
 0x186   : > { %v965_v49 = vadd.f32 %v964_v42, %v2349_v32  ;;  %v1158_v51 = vadd.f32 %v1157_v44, %v2351_v33  ;;  %v966_v52 = vpop.f32.mrb[57].mxu0  ;;  %v1159_v53 = vpop.f32.mrb[57].mxu1  ;;  %v1458_v60 = vmul.f32 %v2372_v48, %v1308_v29 }
 0x187   : > { %1597 = vst [vmem:[%s2415_s8 + $0xc8] sm:$0xff] %v1565_v31  ;;  %v1534_v54 = vadd.f32 %v1502_v34, %v1454_v26  ;;  %v1457_v55 = vmul.f32 %v2375_v50, %v1307_v40  ;;  %v967_v56 = vadd.f32 %v966_v52, %v2356_v35  ;;  %v1160_v57 = vadd.f32 %v1159_v53, %v2358_v36  ;;  %v968_v58 = vpop.f32.mrb[58].mxu0  ;;  %v1161_v59 = vpop.f32.mrb[58].mxu1 }
 0x188   : > { %v1310_v62 = vmax.f32 %v965_v49, %v2360_v37  ;;  %v1312_v63 = vmax.f32 %v1158_v51, %v2362_v38  ;;  %v969_v0 = vadd.f32 %v968_v58, %v2349_v32  ;;  %v970_v1 = vpop.f32.mrb[59].mxu0  ;;  %v1163_v2 = vpop.f32.mrb[59].mxu1  ;;  %v1459_v5 = vmul.f32 %v2383_v61, %v1309_v46 }
 0x189   : > { %v1566_v3 = vadd.f32 %v1534_v54, %v1455_v45  ;;  %v1503_v4 = vadd.f32 %v1457_v55, %v1456_v39  ;;  %v1311_v6 = vmax.f32 %v967_v56, %v2364_v41  ;;  %v1313_v8 = vmax.f32 %v1160_v57, %v2370_v47 }
 0x18a   : > { %v1460_v7 = vmul.f32 %v2367_v43, %v1310_v62  ;;  %v1314_v9 = vmax.f32 %v969_v0, %v2360_v37  ;;  %v1162_v10 = vadd.f32 %v1161_v59, %v2351_v33  ;;  %v1462_v12 = vmul.f32 %v2372_v48, %v1312_v63 }
 0x18b   : > { %1598 = vst [vmem:[%s2415_s8 + $0xd0] sm:$0xff] %v1566_v3  ;;  %v1535_v11 = vadd.f32 %v1503_v4, %v1458_v60  ;;  %v1461_v13 = vmul.f32 %v2375_v50, %v1311_v6  ;;  %v971_v14 = vadd.f32 %v970_v1, %v2356_v35  ;;  %v1164_v16 = vadd.f32 %v1163_v2, %v2358_v36 }
 0x18c   : > { %v1316_v15 = vmax.f32 %v1162_v10, %v2362_v38  ;;  %v1464_v19 = vmul.f32 %v2367_v43, %v1314_v9  ;;  %v1463_v23 = vmul.f32 %v2383_v61, %v1313_v8 }
 0x18d   : > { %v1567_v17 = vadd.f32 %v1535_v11, %v1459_v5  ;;  %v1504_v18 = vadd.f32 %v1461_v13, %v1460_v7  ;;  %v1315_v20 = vmax.f32 %v971_v14, %v2364_v41  ;;  %v974_v21 = vpop.f32.mrb[60].mxu0  ;;  %v1167_v22 = vpop.f32.mrb[60].mxu1  ;;  %v1317_v24 = vmax.f32 %v1164_v16, %v2370_v47 }
 0x18e   : > { %v975_v25 = vadd.f32 %v974_v21, %v2349_v32  ;;  %v1168_v26 = vadd.f32 %v1167_v22, %v2351_v33  ;;  %v976_v27 = vpop.f32.mrb[61].mxu0  ;;  %v1169_v28 = vpop.f32.mrb[61].mxu1  ;;  %v1466_v42 = vmul.f32 %v2372_v48, %v1316_v15 }
 0x18f   : > { %1599 = vst [vmem:[%s2415_s8 + $0xd8] sm:$0xff] %v1567_v17  ;;  %v1536_v29 = vadd.f32 %v1504_v18, %v1462_v12  ;;  %v1465_v30 = vmul.f32 %v2375_v50, %v1315_v20  ;;  %v977_v31 = vadd.f32 %v976_v27, %v2356_v35  ;;  %v1170_v34 = vadd.f32 %v1169_v28, %v2358_v36  ;;  %v978_v39 = vpop.f32.mrb[62].mxu0  ;;  %v1171_v40 = vpop.f32.mrb[62].mxu1 }
 0x190   : > { %v1318_v44 = vmax.f32 %v975_v25, %v2360_v37  ;;  %v1320_v45 = vmax.f32 %v1168_v26, %v2362_v38  ;;  %v979_v46 = vadd.f32 %v978_v39, %v2349_v32  ;;  %v980_v49 = vpop.f32.mrb[63].mxu0  ;;  %v1173_v51 = vpop.f32.mrb[63].mxu1  ;;  %v1467_v54 = vmul.f32 %v2383_v61, %v1317_v24 }
 0x191   : > { %v1568_v52 = vadd.f32 %v1536_v29, %v1463_v23  ;;  %v1505_v53 = vadd.f32 %v1465_v30, %v1464_v19  ;;  %v1319_v55 = vmax.f32 %v977_v31, %v2364_v41  ;;  %v1321_v57 = vmax.f32 %v1170_v34, %v2370_v47 }
 0x192   : > { %v1468_v56 = vmul.f32 %v2367_v43, %v1318_v44  ;;  %v1322_v58 = vmax.f32 %v979_v46, %v2360_v37  ;;  %v1172_v59 = vadd.f32 %v1171_v40, %v2351_v33  ;;  %v1470_v32 = vmul.f32 %v2372_v48, %v1320_v45 }
 0x193   : > { %1600 = vst [vmem:[%s2415_s8 + $0xe0] sm:$0xff] %v1568_v52  ;;  %v1537_v60 = vadd.f32 %v1505_v53, %v1466_v42  ;;  %v1469_v62 = vmul.f32 %v2375_v50, %v1319_v55  ;;  %v981_v63 = vadd.f32 %v980_v49, %v2356_v35  ;;  %v1174_v1 = vadd.f32 %v1173_v51, %v2358_v36 }
 0x194   : > { %v1472_v0 = vmul.f32 %v2367_v43, %v1322_v58  ;;  %v1324_v37 = vmax.f32 %v1172_v59, %v2362_v38  ;;  %v1471_v4 = vmul.f32 %v2383_v61, %v1321_v57 }
 0x195   : > { %v1569_v2 = vadd.f32 %v1537_v60, %v1467_v54  ;;  %v1506_v3 = vadd.f32 %v1469_v62, %v1468_v56  ;;  %v1323_v33 = vmax.f32 %v981_v63, %v2364_v41  ;;  %v1325_v6 = vmax.f32 %v1174_v1, %v2370_v47 }
 0x196   : > { %v1474_v36 = vmul.f32 %v2372_v48, %v1324_v37 }
 0x197   : > { %1601 = vst [vmem:[%s2415_s8 + $0xe8] sm:$0xff] %v1569_v2  ;;  %v1538_v5 = vadd.f32 %v1506_v3, %v1470_v32  ;;  %v1473_v35 = vmul.f32 %v2375_v50, %v1323_v33  ;;  %v1475_v38 = vmul.f32 %v2383_v61, %v1325_v6 }
 0x199   : > { %v1570_v43 = vadd.f32 %v1538_v5, %v1471_v4  ;;  %v1507_v7 = vadd.f32 %v1473_v35, %v1472_v0 }
 0x19b   : > { %1602 = vst [vmem:[%s2415_s8 + $0xf0] sm:$0xff] %v1570_v43  ;;  %v1539_v41 = vadd.f32 %v1507_v7, %v1474_v36 }
 0x19d   : > { %v1571_v47 = vadd.f32 %v1539_v41, %v1475_v38 }
 0x19f   : > { %1603 = vst [vmem:[%s2415_s8 + $0xf8] sm:$0xff] %v1571_v47 }
 0x1a0   : > { %1991 = shalt.err (!%p1988_p3)
}
 0x1a1   : > { %s1992_s25 = scalar_lea.hbm %s2801_s13, 4096  ;;  %s1996_s30 = scalar_lea.hbm %s2854_s5, 8192 }
 0x1a2   : > { %p1993_p4 = scmp.ne.s32.totalorder %s2801_s13, %s1992_s25  ;;  %p1997_p9 = scmp.lt.u32.totalorder %s2801_s13, %s2854_s5 }
 0x1a3   : > { %p1998_p10 = scmp.lt.u32.totalorder %s1996_s30, %s1992_s25  ;;  %p2000_p12 = scmp.lt.u32.totalorder %s1992_s25, %s2801_s13 }
 0x1a4   : > { %p1994_p7 = pnand %p1993_p4, %p2113_p5 }
 0x1a5   : > { %p1999_p11 = por %p1998_p10, %p1997_p9 }
 0x1a6   : > { %p1995_p8 = pneg %p1994_p7 }
 0x1a7   : > { %p2001_p13 = por %p2000_p12, %p1999_p11 }
 0x1a9   : > { %p2002_p0 = pnand %p2001_p13, %p1995_p8 }
 0x1ab   : > { %2005 = shalt.err (!%p2002_p0)
}
 0x1ac   : > { %s2043_s8 = smov 128   ;;  %s2044_s9 = smov 8  }
 0x1ad   : > { %1813 = dma.vmem_to_hbm [thread:$0]  (%p2113_p5), %s2803_s10, 4096, %s2801_s13, %s2808_s14, %s2043_s8, %s2043_s8, %s2044_s9  }
 0x1ae PF: > { %p1819_p1 = scmp.ge.s32.totalorder %s2040_s21, 2  ;;  %s1633_s11 = sand.u32 1, %s2028_s18  }
 0x1af   : > { %s1634_s12 = scalar_lea.sflag [#allocation3], %s1633_s11 }
 0x1b0   : > { %p1816_p2 = pnand %p1819_p1, %p2117_p6 }
 0x1b2   : > { %2023 = dma.done.wait (!%p1816_p2), %s1634_s12, 4096  }
 0x1b3   : > { %2025 = vsyncadd (!%p1816_p2), %s1634_s12, 4294963200  ;;  %p15_p3 = scmp.ge.s32.totalorder %s2100_s24, 4   ;;  %s2857_s18 = smov %s2032_s19 }
 0x1b4   : > { %s2858_s19 = smov %s2036_s20  ;;  %s2859_s20 = smov %s2111_s27 }
 0x1b5   : > { %s2860_s21 = smov %s2100_s24  ;;  %17 = sbr.rel (!%p15_p3) target bundleno = 3 (0x3), region = 75 }
 0x1bc   :  { %1639 = vsyncpa [#allocation3], 1 }
 0x1bd   :  { %1641 = vsyncpa [#allocation3 + $0x1], 1 }

</bundles_post_ra>
